<compile_context>
chip_gen: v7x
topology: tpu7x:2x2x1
jax: 0.10.0
libtpu: 0.0.40
codegen_flags: <defaults>
</compile_context>

<pallas_src>
import functools

import jax
import jax.numpy as jnp
import numpy as np
from jax.experimental import pallas as pl
from jax.experimental.pallas import tpu as pltpu


def _round_up(n, m):
    return ((n + m - 1) // m) * m


def _padded_tile_bytes(rows, cols, itemsize=4):
    """f32 VMEM bytes of a 2-D tile after (8, 128) sublane/lane padding."""
    return _round_up(max(rows, 1), 8) * _round_up(max(cols, 1), 128) * itemsize


def _pick_row_tile(ho, wo, c):
    """Largest divisor of Ho whose f32 patch tile fits the per-tile budget and
    keeps the output block's sublane dim aligned (or covers the full extent)."""
    budget = 8 * 2 ** 20
    best = None
    for tr in range(1, ho + 1):
        if ho % tr:
            continue
        if tr != ho and (tr * wo) % 8:
            continue
        if _padded_tile_bytes(tr * wo, 25 * c) <= budget:
            best = tr
    return best if best is not None else ho


def _downsample_kernel(x_ref, w_ref, b_ref, o_ref, patch_ref, *, tr, wo, c_in):
    """One (image, output-row tile) per grid step.

    x_ref:     (1, 4, Hp2, Wp2, C_in) stride-2 phase planes of the padded
                                      image, p = 2*(row%2) + (col%2); the block
                                      index is invariant along grid axis 1, so
                                      it is DMA'd once per image.
    w_ref:     (25*C_in, C_out)       folded 5x5 taps; K is tap-major
                                      (t = 5*di + dj), channel-minor.
    b_ref:     (1, C_out)             combined bias (b1 + b2).
    o_ref:     (1, tr*wo, C_out)      channels-last output tile.
    patch_ref: (tr*wo, 25*C_in) VMEM  im2col patch scratch for this tile.
    """
    r0 = pl.program_id(1) * tr

    # Build the patch matrix once (25 static tap slices of the VMEM-resident
    # phase planes), then contract all 25 taps in a single MXU matmul with
    # K = 25*C_in instead of 25 tiny K = C_in matmuls.
    for t in range(25):
        di, dj = divmod(t, 5)
        p = 2 * (di % 2) + (dj % 2)
        u, v = di // 2, dj // 2
        tap = x_ref[0, p, pl.ds(r0 + u, tr), v:v + wo, :]        # (tr, wo, C_in)
        patch_ref[:, t * c_in:(t + 1) * c_in] = (
            tap.reshape(tr * wo, c_in).astype(jnp.float32))

    acc = jnp.dot(patch_ref[...], w_ref[...],
                  preferred_element_type=jnp.float32)            # (tr*wo, C_out)
    o_ref[0] = (acc + b_ref[...]).astype(o_ref.dtype)


def downsample_forward(x_nchw, w1, b1, w2, b2, temb=None, cemb=None):
    """Forward pass of DownSample: c1(x) + c2(x).  x_nchw: (B, C, H, W)."""
    del temb, cemb  # accepted but unused, matching the PyTorch forward
    B, C, H, W = x_nchw.shape
    Ho = (H - 1) // 2 + 1
    Wo = (W - 1) // 2 + 1
    Hp2, Wp2 = Ho + 2, Wo + 2          # phase-plane spatial extents

    # ---- fold conv1 (3x3, pad=1) into conv2 (5x5, pad=2): identical stride-2
    #      window positions, the 3x3 support is the 5x5 interior.
    wc = w2 + jnp.pad(w1, ((0, 0), (0, 0), (1, 1), (1, 1)))         # (Co,Ci,5,5)
    w_mat = jnp.transpose(wc, (2, 3, 1, 0)).reshape(25 * C, C)       # (25*Ci,Co)
    w_mat = w_mat.astype(jnp.float32)
    bias = (b1 + b2).reshape(1, C).astype(jnp.float32)

    # ---- pad by 2 and stride-2 space-to-depth, done as a single pad + one
    #      transpose in NCHW (XLA fuses them into one pass over the input);
    #      channels land on the lane axis, phase p = 2*(row%2) + (col%2).
    xp = jnp.pad(x_nchw, ((0, 0), (0, 0),
                          (2, 2 * Hp2 - H - 2),
                          (2, 2 * Wp2 - W - 2)))                     # (B,C,2Hp2,2Wp2)
    xs = xp.reshape(B, C, Hp2, 2, Wp2, 2)
    xs = jnp.transpose(xs, (0, 3, 5, 2, 4, 1)).reshape(B, 4, Hp2, Wp2, C)

    tr = _pick_row_tile(Ho, Wo, C)
    n_row_tiles = Ho // tr

    # VMEM budget from padded tile shapes (double-buffered grid blocks +
    # single-buffered patch scratch + margin).
    in_bytes = 4 * Hp2 * _padded_tile_bytes(Wp2, C)
    w_bytes = _padded_tile_bytes(25 * C, C)
    b_bytes = _padded_tile_bytes(1, C)
    out_bytes = _padded_tile_bytes(tr * Wo, C)
    patch_bytes = _padded_tile_bytes(tr * Wo, 25 * C)
    need = 2 * (in_bytes + w_bytes + b_bytes + out_bytes) + patch_bytes + (2 << 20)
    vmem_limit = int(min(max(need, 8 * 2 ** 20), 56 * 2 ** 20))
    # TODO(synk): for very large images, switch to halo'd input row blocks so a
    # whole image's phase planes never need to be VMEM-resident (v7x: 64 MiB).

    kernel = functools.partial(_downsample_kernel, tr=tr, wo=Wo, c_in=C)
    out_flat = pl.pallas_call(
        kernel,
        out_shape=jax.ShapeDtypeStruct((B, Ho * Wo, C), x_nchw.dtype),
        grid=(B, n_row_tiles),
        in_specs=[
            # Full phase planes of one image; constant along the row-tile axis
            # -> fetched once per image and kept resident across row tiles.
            pl.BlockSpec((1, 4, Hp2, Wp2, C), lambda b, r: (b, 0, 0, 0, 0)),
            # Weights / bias: constant index_map -> DMA'd once, kept resident.
            pl.BlockSpec((25 * C, C), lambda b, r: (0, 0)),
            pl.BlockSpec((1, C), lambda b, r: (0, 0)),
        ],
        out_specs=pl.BlockSpec((1, tr * Wo, C), lambda b, r: (b, r, 0)),
        scratch_shapes=[pltpu.VMEM((tr * Wo, 25 * C), jnp.float32)],
        compiler_params=pltpu.CompilerParams(
            dimension_semantics=("parallel", "parallel"),
            vmem_limit_bytes=vmem_limit),
    )(xs, w_mat, bias)

    # Channels-last kernel output -> one fused NCHW transpose over the (4x
    # smaller) output in the wrapper; no per-tile transpose in the kernel.
    return jnp.transpose(out_flat.reshape(B, Ho, Wo, C), (0, 3, 1, 2))


def _conv_ref(x, w, b, stride, pad):
    y = jax.lax.conv_general_dilated(
        x, w, window_strides=(stride, stride),
        padding=[(pad, pad), (pad, pad)],
        dimension_numbers=("NCHW", "OIHW", "NCHW"))
    return y + b.reshape(1, -1, 1, 1)


if __name__ == "__main__":
    B, C, H, W = 2, 4, 16, 16
    key = jax.random.PRNGKey(0)
    kx, kw1, kb1, kw2, kb2 = jax.random.split(key, 5)

    x = jax.random.normal(kx, (B, C, H, W), dtype=jnp.float32)

    # Deterministic PyTorch-Conv2d-style uniform init (bound = 1/sqrt(fan_in)).
    fan1 = C * 3 * 3
    fan2 = C * 5 * 5
    w1 = jax.random.uniform(kw1, (C, C, 3, 3), jnp.float32,
                            -1.0 / np.sqrt(fan1), 1.0 / np.sqrt(fan1))
    b1 = jax.random.uniform(kb1, (C,), jnp.float32,
                            -1.0 / np.sqrt(fan1), 1.0 / np.sqrt(fan1))
    w2 = jax.random.uniform(kw2, (C, C, 5, 5), jnp.float32,
                            -1.0 / np.sqrt(fan2), 1.0 / np.sqrt(fan2))
    b2 = jax.random.uniform(kb2, (C,), jnp.float32,
                            -1.0 / np.sqrt(fan2), 1.0 / np.sqrt(fan2))

    # temb / cemb are accepted but unused by the PyTorch forward.
    out = downsample_forward(x, w1, b1, w2, b2, temb=None, cemb=None)
    out = jax.block_until_ready(out)

    ref = _conv_ref(x, w1, b1, 2, 1) + _conv_ref(x, w2, b2, 2, 2)
    np.testing.assert_allclose(np.asarray(out), np.asarray(ref),
                               rtol=1e-4, atol=1e-5)
    assert out.shape == (B, C, H // 2, W // 2)

    print("KERNEL_OK")
</pallas_src>

<mosaic_0001>
module attributes {stable_mosaic.version = 11 : i64} {
  func.func @_downsample_kernel(%arg0: i32, %arg1: i32, %arg2: memref<1x4x10x10x4xf32, #tpu.memory_space<vmem>>, %arg3: memref<100x4xf32, #tpu.memory_space<vmem>>, %arg4: memref<1x4xf32, #tpu.memory_space<vmem>>, %arg5: memref<1x64x4xf32, #tpu.memory_space<vmem>>, %arg6: memref<64x100xf32, #tpu.memory_space<vmem>>) attributes {dimension_semantics = [#tpu.dimension_semantics<parallel>, #tpu.dimension_semantics<parallel>], iteration_bounds = array<i64: 2, 1>, scalar_prefetch = 0 : i64, scratch_operands = 1 : i64, tpu.core_type = #tpu.core_type<tc>, window_params = [{transform_indices = @transform_0, window_bounds = array<i64: 1, 4, 10, 10, 4>}, {pipeline_mode = #tpu.pipeline_mode<synchronous>, transform_indices = @transform_1, window_bounds = array<i64: 100, 4>}, {pipeline_mode = #tpu.pipeline_mode<synchronous>, transform_indices = @transform_2, window_bounds = array<i64: 1, 4>}, {transform_indices = @transform_3, window_bounds = array<i64: 1, 64, 4>}]} {
    %c8_i32 = arith.constant 8 : i32
    %0 = arith.muli %arg1, %c8_i32 : i32
    %c0_i32 = arith.constant 0 : i32
    %1 = arith.addi %0, %c0_i32 : i32
    %c0 = arith.constant 0 : index
    %c0_0 = arith.constant 0 : index
    %2 = arith.index_cast %1 : i32 to index
    %c0_1 = arith.constant 0 : index
    %c0_2 = arith.constant 0 : index
    %3 = vector.load %arg2[%c0, %c0_0, %2, %c0_1, %c0_2] : memref<1x4x10x10x4xf32, #tpu.memory_space<vmem>>, vector<1x1x8x8x4xf32>
    %4 = vector.shape_cast %3 : vector<1x1x8x8x4xf32> to vector<8x8x4xf32>
    %5 = vector.shape_cast %4 : vector<8x8x4xf32> to vector<64x4xf32>
    %c0_3 = arith.constant 0 : index
    %c0_4 = arith.constant 0 : index
    %6 = vector.load %arg6[%c0_3, %c0_4] : memref<64x100xf32, #tpu.memory_space<vmem>>, vector<64x4xf32>
    tpu.vector_store %arg6[%c0_3, %c0_4], %5 {strides = array<i32>} : memref<64x100xf32, #tpu.memory_space<vmem>>, vector<64x4xf32>,
    %c0_i32_5 = arith.constant 0 : i32
    %7 = arith.addi %0, %c0_i32_5 : i32
    %c0_6 = arith.constant 0 : index
    %c1 = arith.constant 1 : index
    %8 = arith.index_cast %7 : i32 to index
    %c0_7 = arith.constant 0 : index
    %c0_8 = arith.constant 0 : index
    %9 = vector.load %arg2[%c0_6, %c1, %8, %c0_7, %c0_8] : memref<1x4x10x10x4xf32, #tpu.memory_space<vmem>>, vector<1x1x8x8x4xf32>
    %10 = vector.shape_cast %9 : vector<1x1x8x8x4xf32> to vector<8x8x4xf32>
    %11 = vector.shape_cast %10 : vector<8x8x4xf32> to vector<64x4xf32>
    %c0_9 = arith.constant 0 : index
    %c4 = arith.constant 4 : index
    %12 = vector.load %arg6[%c0_9, %c4] : memref<64x100xf32, #tpu.memory_space<vmem>>, vector<64x4xf32>
    tpu.vector_store %arg6[%c0_9, %c4], %11 {strides = array<i32>} : memref<64x100xf32, #tpu.memory_space<vmem>>, vector<64x4xf32>,
    %c0_i32_10 = arith.constant 0 : i32
    %13 = arith.addi %0, %c0_i32_10 : i32
    %c0_11 = arith.constant 0 : index
    %c0_12 = arith.constant 0 : index
    %14 = arith.index_cast %13 : i32 to index
    %c1_13 = arith.constant 1 : index
    %c0_14 = arith.constant 0 : index
    %15 = vector.load %arg2[%c0_11, %c0_12, %14, %c1_13, %c0_14] : memref<1x4x10x10x4xf32, #tpu.memory_space<vmem>>, vector<1x1x8x8x4xf32>
    %16 = vector.shape_cast %15 : vector<1x1x8x8x4xf32> to vector<8x8x4xf32>
    %17 = vector.shape_cast %16 : vector<8x8x4xf32> to vector<64x4xf32>
    %c0_15 = arith.constant 0 : index
    %c8 = arith.constant 8 : index
    %18 = vector.load %arg6[%c0_15, %c8] : memref<64x100xf32, #tpu.memory_space<vmem>>, vector<64x4xf32>
    tpu.vector_store %arg6[%c0_15, %c8], %17 {strides = array<i32>} : memref<64x100xf32, #tpu.memory_space<vmem>>, vector<64x4xf32>,
    %c0_i32_16 = arith.constant 0 : i32
    %19 = arith.addi %0, %c0_i32_16 : i32
    %c0_17 = arith.constant 0 : index
    %c1_18 = arith.constant 1 : index
    %20 = arith.index_cast %19 : i32 to index
    %c1_19 = arith.constant 1 : index
    %c0_20 = arith.constant 0 : index
    %21 = vector.load %arg2[%c0_17, %c1_18, %20, %c1_19, %c0_20] : memref<1x4x10x10x4xf32, #tpu.memory_space<vmem>>, vector<1x1x8x8x4xf32>
    %22 = vector.shape_cast %21 : vector<1x1x8x8x4xf32> to vector<8x8x4xf32>
    %23 = vector.shape_cast %22 : vector<8x8x4xf32> to vector<64x4xf32>
    %c0_21 = arith.constant 0 : index
    %c12 = arith.constant 12 : index
    %24 = vector.load %arg6[%c0_21, %c12] : memref<64x100xf32, #tpu.memory_space<vmem>>, vector<64x4xf32>
    tpu.vector_store %arg6[%c0_21, %c12], %23 {strides = array<i32>} : memref<64x100xf32, #tpu.memory_space<vmem>>, vector<64x4xf32>,
    %c0_i32_22 = arith.constant 0 : i32
    %25 = arith.addi %0, %c0_i32_22 : i32
    %c0_23 = arith.constant 0 : index
    %c0_24 = arith.constant 0 : index
    %26 = arith.index_cast %25 : i32 to index
    %c2 = arith.constant 2 : index
    %c0_25 = arith.constant 0 : index
    %27 = vector.load %arg2[%c0_23, %c0_24, %26, %c2, %c0_25] : memref<1x4x10x10x4xf32, #tpu.memory_space<vmem>>, vector<1x1x8x8x4xf32>
    %28 = vector.shape_cast %27 : vector<1x1x8x8x4xf32> to vector<8x8x4xf32>
    %29 = vector.shape_cast %28 : vector<8x8x4xf32> to vector<64x4xf32>
    %c0_26 = arith.constant 0 : index
    %c16 = arith.constant 16 : index
    %30 = vector.load %arg6[%c0_26, %c16] : memref<64x100xf32, #tpu.memory_space<vmem>>, vector<64x4xf32>
    tpu.vector_store %arg6[%c0_26, %c16], %29 {strides = array<i32>} : memref<64x100xf32, #tpu.memory_space<vmem>>, vector<64x4xf32>,
    %c0_i32_27 = arith.constant 0 : i32
    %31 = arith.addi %0, %c0_i32_27 : i32
    %c0_28 = arith.constant 0 : index
    %c2_29 = arith.constant 2 : index
    %32 = arith.index_cast %31 : i32 to index
    %c0_30 = arith.constant 0 : index
    %c0_31 = arith.constant 0 : index
    %33 = vector.load %arg2[%c0_28, %c2_29, %32, %c0_30, %c0_31] : memref<1x4x10x10x4xf32, #tpu.memory_space<vmem>>, vector<1x1x8x8x4xf32>
    %34 = vector.shape_cast %33 : vector<1x1x8x8x4xf32> to vector<8x8x4xf32>
    %35 = vector.shape_cast %34 : vector<8x8x4xf32> to vector<64x4xf32>
    %c0_32 = arith.constant 0 : index
    %c20 = arith.constant 20 : index
    %36 = vector.load %arg6[%c0_32, %c20] : memref<64x100xf32, #tpu.memory_space<vmem>>, vector<64x4xf32>
    tpu.vector_store %arg6[%c0_32, %c20], %35 {strides = array<i32>} : memref<64x100xf32, #tpu.memory_space<vmem>>, vector<64x4xf32>,
    %c0_i32_33 = arith.constant 0 : i32
    %37 = arith.addi %0, %c0_i32_33 : i32
    %c0_34 = arith.constant 0 : index
    %c3 = arith.constant 3 : index
    %38 = arith.index_cast %37 : i32 to index
    %c0_35 = arith.constant 0 : index
    %c0_36 = arith.constant 0 : index
    %39 = vector.load %arg2[%c0_34, %c3, %38, %c0_35, %c0_36] : memref<1x4x10x10x4xf32, #tpu.memory_space<vmem>>, vector<1x1x8x8x4xf32>
    %40 = vector.shape_cast %39 : vector<1x1x8x8x4xf32> to vector<8x8x4xf32>
    %41 = vector.shape_cast %40 : vector<8x8x4xf32> to vector<64x4xf32>
    %c0_37 = arith.constant 0 : index
    %c24 = arith.constant 24 : index
    %42 = vector.load %arg6[%c0_37, %c24] : memref<64x100xf32, #tpu.memory_space<vmem>>, vector<64x4xf32>
    tpu.vector_store %arg6[%c0_37, %c24], %41 {strides = array<i32>} : memref<64x100xf32, #tpu.memory_space<vmem>>, vector<64x4xf32>,
    %c0_i32_38 = arith.constant 0 : i32
    %43 = arith.addi %0, %c0_i32_38 : i32
    %c0_39 = arith.constant 0 : index
    %c2_40 = arith.constant 2 : index
    %44 = arith.index_cast %43 : i32 to index
    %c1_41 = arith.constant 1 : index
    %c0_42 = arith.constant 0 : index
    %45 = vector.load %arg2[%c0_39, %c2_40, %44, %c1_41, %c0_42] : memref<1x4x10x10x4xf32, #tpu.memory_space<vmem>>, vector<1x1x8x8x4xf32>
    %46 = vector.shape_cast %45 : vector<1x1x8x8x4xf32> to vector<8x8x4xf32>
    %47 = vector.shape_cast %46 : vector<8x8x4xf32> to vector<64x4xf32>
    %c0_43 = arith.constant 0 : index
    %c28 = arith.constant 28 : index
    %48 = vector.load %arg6[%c0_43, %c28] : memref<64x100xf32, #tpu.memory_space<vmem>>, vector<64x4xf32>
    tpu.vector_store %arg6[%c0_43, %c28], %47 {strides = array<i32>} : memref<64x100xf32, #tpu.memory_space<vmem>>, vector<64x4xf32>,
    %c0_i32_44 = arith.constant 0 : i32
    %49 = arith.addi %0, %c0_i32_44 : i32
    %c0_45 = arith.constant 0 : index
    %c3_46 = arith.constant 3 : index
    %50 = arith.index_cast %49 : i32 to index
    %c1_47 = arith.constant 1 : index
    %c0_48 = arith.constant 0 : index
    %51 = vector.load %arg2[%c0_45, %c3_46, %50, %c1_47, %c0_48] : memref<1x4x10x10x4xf32, #tpu.memory_space<vmem>>, vector<1x1x8x8x4xf32>
    %52 = vector.shape_cast %51 : vector<1x1x8x8x4xf32> to vector<8x8x4xf32>
    %53 = vector.shape_cast %52 : vector<8x8x4xf32> to vector<64x4xf32>
    %c0_49 = arith.constant 0 : index
    %c32 = arith.constant 32 : index
    %54 = vector.load %arg6[%c0_49, %c32] : memref<64x100xf32, #tpu.memory_space<vmem>>, vector<64x4xf32>
    tpu.vector_store %arg6[%c0_49, %c32], %53 {strides = array<i32>} : memref<64x100xf32, #tpu.memory_space<vmem>>, vector<64x4xf32>,
    %c0_i32_50 = arith.constant 0 : i32
    %55 = arith.addi %0, %c0_i32_50 : i32
    %c0_51 = arith.constant 0 : index
    %c2_52 = arith.constant 2 : index
    %56 = arith.index_cast %55 : i32 to index
    %c2_53 = arith.constant 2 : index
    %c0_54 = arith.constant 0 : index
    %57 = vector.load %arg2[%c0_51, %c2_52, %56, %c2_53, %c0_54] : memref<1x4x10x10x4xf32, #tpu.memory_space<vmem>>, vector<1x1x8x8x4xf32>
    %58 = vector.shape_cast %57 : vector<1x1x8x8x4xf32> to vector<8x8x4xf32>
    %59 = vector.shape_cast %58 : vector<8x8x4xf32> to vector<64x4xf32>
    %c0_55 = arith.constant 0 : index
    %c36 = arith.constant 36 : index
    %60 = vector.load %arg6[%c0_55, %c36] : memref<64x100xf32, #tpu.memory_space<vmem>>, vector<64x4xf32>
    tpu.vector_store %arg6[%c0_55, %c36], %59 {strides = array<i32>} : memref<64x100xf32, #tpu.memory_space<vmem>>, vector<64x4xf32>,
    %c1_i32 = arith.constant 1 : i32
    %61 = arith.addi %0, %c1_i32 : i32
    %c0_56 = arith.constant 0 : index
    %c0_57 = arith.constant 0 : index
    %62 = arith.index_cast %61 : i32 to index
    %c0_58 = arith.constant 0 : index
    %c0_59 = arith.constant 0 : index
    %63 = vector.load %arg2[%c0_56, %c0_57, %62, %c0_58, %c0_59] : memref<1x4x10x10x4xf32, #tpu.memory_space<vmem>>, vector<1x1x8x8x4xf32>
    %64 = vector.shape_cast %63 : vector<1x1x8x8x4xf32> to vector<8x8x4xf32>
    %65 = vector.shape_cast %64 : vector<8x8x4xf32> to vector<64x4xf32>
    %c0_60 = arith.constant 0 : index
    %c40 = arith.constant 40 : index
    %66 = vector.load %arg6[%c0_60, %c40] : memref<64x100xf32, #tpu.memory_space<vmem>>, vector<64x4xf32>
    tpu.vector_store %arg6[%c0_60, %c40], %65 {strides = array<i32>} : memref<64x100xf32, #tpu.memory_space<vmem>>, vector<64x4xf32>,
    %c1_i32_61 = arith.constant 1 : i32
    %67 = arith.addi %0, %c1_i32_61 : i32
    %c0_62 = arith.constant 0 : index
    %c1_63 = arith.constant 1 : index
    %68 = arith.index_cast %67 : i32 to index
    %c0_64 = arith.constant 0 : index
    %c0_65 = arith.constant 0 : index
    %69 = vector.load %arg2[%c0_62, %c1_63, %68, %c0_64, %c0_65] : memref<1x4x10x10x4xf32, #tpu.memory_space<vmem>>, vector<1x1x8x8x4xf32>
    %70 = vector.shape_cast %69 : vector<1x1x8x8x4xf32> to vector<8x8x4xf32>
    %71 = vector.shape_cast %70 : vector<8x8x4xf32> to vector<64x4xf32>
    %c0_66 = arith.constant 0 : index
    %c44 = arith.constant 44 : index
    %72 = vector.load %arg6[%c0_66, %c44] : memref<64x100xf32, #tpu.memory_space<vmem>>, vector<64x4xf32>
    tpu.vector_store %arg6[%c0_66, %c44], %71 {strides = array<i32>} : memref<64x100xf32, #tpu.memory_space<vmem>>, vector<64x4xf32>,
    %c1_i32_67 = arith.constant 1 : i32
    %73 = arith.addi %0, %c1_i32_67 : i32
    %c0_68 = arith.constant 0 : index
    %c0_69 = arith.constant 0 : index
    %74 = arith.index_cast %73 : i32 to index
    %c1_70 = arith.constant 1 : index
    %c0_71 = arith.constant 0 : index
    %75 = vector.load %arg2[%c0_68, %c0_69, %74, %c1_70, %c0_71] : memref<1x4x10x10x4xf32, #tpu.memory_space<vmem>>, vector<1x1x8x8x4xf32>
    %76 = vector.shape_cast %75 : vector<1x1x8x8x4xf32> to vector<8x8x4xf32>
    %77 = vector.shape_cast %76 : vector<8x8x4xf32> to vector<64x4xf32>
    %c0_72 = arith.constant 0 : index
    %c48 = arith.constant 48 : index
    %78 = vector.load %arg6[%c0_72, %c48] : memref<64x100xf32, #tpu.memory_space<vmem>>, vector<64x4xf32>
    tpu.vector_store %arg6[%c0_72, %c48], %77 {strides = array<i32>} : memref<64x100xf32, #tpu.memory_space<vmem>>, vector<64x4xf32>,
    %c1_i32_73 = arith.constant 1 : i32
    %79 = arith.addi %0, %c1_i32_73 : i32
    %c0_74 = arith.constant 0 : index
    %c1_75 = arith.constant 1 : index
    %80 = arith.index_cast %79 : i32 to index
    %c1_76 = arith.constant 1 : index
    %c0_77 = arith.constant 0 : index
    %81 = vector.load %arg2[%c0_74, %c1_75, %80, %c1_76, %c0_77] : memref<1x4x10x10x4xf32, #tpu.memory_space<vmem>>, vector<1x1x8x8x4xf32>
    %82 = vector.shape_cast %81 : vector<1x1x8x8x4xf32> to vector<8x8x4xf32>
    %83 = vector.shape_cast %82 : vector<8x8x4xf32> to vector<64x4xf32>
    %c0_78 = arith.constant 0 : index
    %c52 = arith.constant 52 : index
    %84 = vector.load %arg6[%c0_78, %c52] : memref<64x100xf32, #tpu.memory_space<vmem>>, vector<64x4xf32>
    tpu.vector_store %arg6[%c0_78, %c52], %83 {strides = array<i32>} : memref<64x100xf32, #tpu.memory_space<vmem>>, vector<64x4xf32>,
    %c1_i32_79 = arith.constant 1 : i32
    %85 = arith.addi %0, %c1_i32_79 : i32
    %c0_80 = arith.constant 0 : index
    %c0_81 = arith.constant 0 : index
    %86 = arith.index_cast %85 : i32 to index
    %c2_82 = arith.constant 2 : index
    %c0_83 = arith.constant 0 : index
    %87 = vector.load %arg2[%c0_80, %c0_81, %86, %c2_82, %c0_83] : memref<1x4x10x10x4xf32, #tpu.memory_space<vmem>>, vector<1x1x8x8x4xf32>
    %88 = vector.shape_cast %87 : vector<1x1x8x8x4xf32> to vector<8x8x4xf32>
    %89 = vector.shape_cast %88 : vector<8x8x4xf32> to vector<64x4xf32>
    %c0_84 = arith.constant 0 : index
    %c56 = arith.constant 56 : index
    %90 = vector.load %arg6[%c0_84, %c56] : memref<64x100xf32, #tpu.memory_space<vmem>>, vector<64x4xf32>
    tpu.vector_store %arg6[%c0_84, %c56], %89 {strides = array<i32>} : memref<64x100xf32, #tpu.memory_space<vmem>>, vector<64x4xf32>,
    %c1_i32_85 = arith.constant 1 : i32
    %91 = arith.addi %0, %c1_i32_85 : i32
    %c0_86 = arith.constant 0 : index
    %c2_87 = arith.constant 2 : index
    %92 = arith.index_cast %91 : i32 to index
    %c0_88 = arith.constant 0 : index
    %c0_89 = arith.constant 0 : index
    %93 = vector.load %arg2[%c0_86, %c2_87, %92, %c0_88, %c0_89] : memref<1x4x10x10x4xf32, #tpu.memory_space<vmem>>, vector<1x1x8x8x4xf32>
    %94 = vector.shape_cast %93 : vector<1x1x8x8x4xf32> to vector<8x8x4xf32>
    %95 = vector.shape_cast %94 : vector<8x8x4xf32> to vector<64x4xf32>
    %c0_90 = arith.constant 0 : index
    %c60 = arith.constant 60 : index
    %96 = vector.load %arg6[%c0_90, %c60] : memref<64x100xf32, #tpu.memory_space<vmem>>, vector<64x4xf32>
    tpu.vector_store %arg6[%c0_90, %c60], %95 {strides = array<i32>} : memref<64x100xf32, #tpu.memory_space<vmem>>, vector<64x4xf32>,
    %c1_i32_91 = arith.constant 1 : i32
    %97 = arith.addi %0, %c1_i32_91 : i32
    %c0_92 = arith.constant 0 : index
    %c3_93 = arith.constant 3 : index
    %98 = arith.index_cast %97 : i32 to index
    %c0_94 = arith.constant 0 : index
    %c0_95 = arith.constant 0 : index
    %99 = vector.load %arg2[%c0_92, %c3_93, %98, %c0_94, %c0_95] : memref<1x4x10x10x4xf32, #tpu.memory_space<vmem>>, vector<1x1x8x8x4xf32>
    %100 = vector.shape_cast %99 : vector<1x1x8x8x4xf32> to vector<8x8x4xf32>
    %101 = vector.shape_cast %100 : vector<8x8x4xf32> to vector<64x4xf32>
    %c0_96 = arith.constant 0 : index
    %c64 = arith.constant 64 : index
    %102 = vector.load %arg6[%c0_96, %c64] : memref<64x100xf32, #tpu.memory_space<vmem>>, vector<64x4xf32>
    tpu.vector_store %arg6[%c0_96, %c64], %101 {strides = array<i32>} : memref<64x100xf32, #tpu.memory_space<vmem>>, vector<64x4xf32>,
    %c1_i32_97 = arith.constant 1 : i32
    %103 = arith.addi %0, %c1_i32_97 : i32
    %c0_98 = arith.constant 0 : index
    %c2_99 = arith.constant 2 : index
    %104 = arith.index_cast %103 : i32 to index
    %c1_100 = arith.constant 1 : index
    %c0_101 = arith.constant 0 : index
    %105 = vector.load %arg2[%c0_98, %c2_99, %104, %c1_100, %c0_101] : memref<1x4x10x10x4xf32, #tpu.memory_space<vmem>>, vector<1x1x8x8x4xf32>
    %106 = vector.shape_cast %105 : vector<1x1x8x8x4xf32> to vector<8x8x4xf32>
    %107 = vector.shape_cast %106 : vector<8x8x4xf32> to vector<64x4xf32>
    %c0_102 = arith.constant 0 : index
    %c68 = arith.constant 68 : index
    %108 = vector.load %arg6[%c0_102, %c68] : memref<64x100xf32, #tpu.memory_space<vmem>>, vector<64x4xf32>
    tpu.vector_store %arg6[%c0_102, %c68], %107 {strides = array<i32>} : memref<64x100xf32, #tpu.memory_space<vmem>>, vector<64x4xf32>,
    %c1_i32_103 = arith.constant 1 : i32
    %109 = arith.addi %0, %c1_i32_103 : i32
    %c0_104 = arith.constant 0 : index
    %c3_105 = arith.constant 3 : index
    %110 = arith.index_cast %109 : i32 to index
    %c1_106 = arith.constant 1 : index
    %c0_107 = arith.constant 0 : index
    %111 = vector.load %arg2[%c0_104, %c3_105, %110, %c1_106, %c0_107] : memref<1x4x10x10x4xf32, #tpu.memory_space<vmem>>, vector<1x1x8x8x4xf32>
    %112 = vector.shape_cast %111 : vector<1x1x8x8x4xf32> to vector<8x8x4xf32>
    %113 = vector.shape_cast %112 : vector<8x8x4xf32> to vector<64x4xf32>
    %c0_108 = arith.constant 0 : index
    %c72 = arith.constant 72 : index
    %114 = vector.load %arg6[%c0_108, %c72] : memref<64x100xf32, #tpu.memory_space<vmem>>, vector<64x4xf32>
    tpu.vector_store %arg6[%c0_108, %c72], %113 {strides = array<i32>} : memref<64x100xf32, #tpu.memory_space<vmem>>, vector<64x4xf32>,
    %c1_i32_109 = arith.constant 1 : i32
    %115 = arith.addi %0, %c1_i32_109 : i32
    %c0_110 = arith.constant 0 : index
    %c2_111 = arith.constant 2 : index
    %116 = arith.index_cast %115 : i32 to index
    %c2_112 = arith.constant 2 : index
    %c0_113 = arith.constant 0 : index
    %117 = vector.load %arg2[%c0_110, %c2_111, %116, %c2_112, %c0_113] : memref<1x4x10x10x4xf32, #tpu.memory_space<vmem>>, vector<1x1x8x8x4xf32>
    %118 = vector.shape_cast %117 : vector<1x1x8x8x4xf32> to vector<8x8x4xf32>
    %119 = vector.shape_cast %118 : vector<8x8x4xf32> to vector<64x4xf32>
    %c0_114 = arith.constant 0 : index
    %c76 = arith.constant 76 : index
    %120 = vector.load %arg6[%c0_114, %c76] : memref<64x100xf32, #tpu.memory_space<vmem>>, vector<64x4xf32>
    tpu.vector_store %arg6[%c0_114, %c76], %119 {strides = array<i32>} : memref<64x100xf32, #tpu.memory_space<vmem>>, vector<64x4xf32>,
    %c2_i32 = arith.constant 2 : i32
    %121 = arith.addi %0, %c2_i32 : i32
    %c0_115 = arith.constant 0 : index
    %c0_116 = arith.constant 0 : index
    %122 = arith.index_cast %121 : i32 to index
    %c0_117 = arith.constant 0 : index
    %c0_118 = arith.constant 0 : index
    %123 = vector.load %arg2[%c0_115, %c0_116, %122, %c0_117, %c0_118] : memref<1x4x10x10x4xf32, #tpu.memory_space<vmem>>, vector<1x1x8x8x4xf32>
    %124 = vector.shape_cast %123 : vector<1x1x8x8x4xf32> to vector<8x8x4xf32>
    %125 = vector.shape_cast %124 : vector<8x8x4xf32> to vector<64x4xf32>
    %c0_119 = arith.constant 0 : index
    %c80 = arith.constant 80 : index
    %126 = vector.load %arg6[%c0_119, %c80] : memref<64x100xf32, #tpu.memory_space<vmem>>, vector<64x4xf32>
    tpu.vector_store %arg6[%c0_119, %c80], %125 {strides = array<i32>} : memref<64x100xf32, #tpu.memory_space<vmem>>, vector<64x4xf32>,
    %c2_i32_120 = arith.constant 2 : i32
    %127 = arith.addi %0, %c2_i32_120 : i32
    %c0_121 = arith.constant 0 : index
    %c1_122 = arith.constant 1 : index
    %128 = arith.index_cast %127 : i32 to index
    %c0_123 = arith.constant 0 : index
    %c0_124 = arith.constant 0 : index
    %129 = vector.load %arg2[%c0_121, %c1_122, %128, %c0_123, %c0_124] : memref<1x4x10x10x4xf32, #tpu.memory_space<vmem>>, vector<1x1x8x8x4xf32>
    %130 = vector.shape_cast %129 : vector<1x1x8x8x4xf32> to vector<8x8x4xf32>
    %131 = vector.shape_cast %130 : vector<8x8x4xf32> to vector<64x4xf32>
    %c0_125 = arith.constant 0 : index
    %c84 = arith.constant 84 : index
    %132 = vector.load %arg6[%c0_125, %c84] : memref<64x100xf32, #tpu.memory_space<vmem>>, vector<64x4xf32>
    tpu.vector_store %arg6[%c0_125, %c84], %131 {strides = array<i32>} : memref<64x100xf32, #tpu.memory_space<vmem>>, vector<64x4xf32>,
    %c2_i32_126 = arith.constant 2 : i32
    %133 = arith.addi %0, %c2_i32_126 : i32
    %c0_127 = arith.constant 0 : index
    %c0_128 = arith.constant 0 : index
    %134 = arith.index_cast %133 : i32 to index
    %c1_129 = arith.constant 1 : index
    %c0_130 = arith.constant 0 : index
    %135 = vector.load %arg2[%c0_127, %c0_128, %134, %c1_129, %c0_130] : memref<1x4x10x10x4xf32, #tpu.memory_space<vmem>>, vector<1x1x8x8x4xf32>
    %136 = vector.shape_cast %135 : vector<1x1x8x8x4xf32> to vector<8x8x4xf32>
    %137 = vector.shape_cast %136 : vector<8x8x4xf32> to vector<64x4xf32>
    %c0_131 = arith.constant 0 : index
    %c88 = arith.constant 88 : index
    %138 = vector.load %arg6[%c0_131, %c88] : memref<64x100xf32, #tpu.memory_space<vmem>>, vector<64x4xf32>
    tpu.vector_store %arg6[%c0_131, %c88], %137 {strides = array<i32>} : memref<64x100xf32, #tpu.memory_space<vmem>>, vector<64x4xf32>,
    %c2_i32_132 = arith.constant 2 : i32
    %139 = arith.addi %0, %c2_i32_132 : i32
    %c0_133 = arith.constant 0 : index
    %c1_134 = arith.constant 1 : index
    %140 = arith.index_cast %139 : i32 to index
    %c1_135 = arith.constant 1 : index
    %c0_136 = arith.constant 0 : index
    %141 = vector.load %arg2[%c0_133, %c1_134, %140, %c1_135, %c0_136] : memref<1x4x10x10x4xf32, #tpu.memory_space<vmem>>, vector<1x1x8x8x4xf32>
    %142 = vector.shape_cast %141 : vector<1x1x8x8x4xf32> to vector<8x8x4xf32>
    %143 = vector.shape_cast %142 : vector<8x8x4xf32> to vector<64x4xf32>
    %c0_137 = arith.constant 0 : index
    %c92 = arith.constant 92 : index
    %144 = vector.load %arg6[%c0_137, %c92] : memref<64x100xf32, #tpu.memory_space<vmem>>, vector<64x4xf32>
    tpu.vector_store %arg6[%c0_137, %c92], %143 {strides = array<i32>} : memref<64x100xf32, #tpu.memory_space<vmem>>, vector<64x4xf32>,
    %c2_i32_138 = arith.constant 2 : i32
    %145 = arith.addi %0, %c2_i32_138 : i32
    %c0_139 = arith.constant 0 : index
    %c0_140 = arith.constant 0 : index
    %146 = arith.index_cast %145 : i32 to index
    %c2_141 = arith.constant 2 : index
    %c0_142 = arith.constant 0 : index
    %147 = vector.load %arg2[%c0_139, %c0_140, %146, %c2_141, %c0_142] : memref<1x4x10x10x4xf32, #tpu.memory_space<vmem>>, vector<1x1x8x8x4xf32>
    %148 = vector.shape_cast %147 : vector<1x1x8x8x4xf32> to vector<8x8x4xf32>
    %149 = vector.shape_cast %148 : vector<8x8x4xf32> to vector<64x4xf32>
    %c0_143 = arith.constant 0 : index
    %c96 = arith.constant 96 : index
    %150 = vector.load %arg6[%c0_143, %c96] : memref<64x100xf32, #tpu.memory_space<vmem>>, vector<64x4xf32>
    tpu.vector_store %arg6[%c0_143, %c96], %149 {strides = array<i32>} : memref<64x100xf32, #tpu.memory_space<vmem>>, vector<64x4xf32>,
    %c0_144 = arith.constant 0 : index
    %c0_145 = arith.constant 0 : index
    %151 = vector.load %arg6[%c0_144, %c0_145] : memref<64x100xf32, #tpu.memory_space<vmem>>, vector<64x100xf32>
    %c0_146 = arith.constant 0 : index
    %c0_147 = arith.constant 0 : index
    %152 = vector.load %arg3[%c0_146, %c0_147] : memref<100x4xf32, #tpu.memory_space<vmem>>, vector<100x4xf32>
    %cst = arith.constant dense<0.000000e+00> : vector<64x4xf32>
    %153 = tpu.matmul %151, %152, %cst {dimension_numbers = #tpu.dot_dimension_numbers<[1], [0], [0], [1], [0, 0, 1, 1], [], []>} : vector<64x100xf32>, vector<100x4xf32>, vector<64x4xf32> -> vector<64x4xf32>
    %c0_148 = arith.constant 0 : index
    %c0_149 = arith.constant 0 : index
    %154 = vector.load %arg4[%c0_148, %c0_149] : memref<1x4xf32, #tpu.memory_space<vmem>>, vector<1x4xf32>
    %155 = vector.broadcast %154 : vector<1x4xf32> to vector<64x4xf32>
    %156 = arith.addf %153, %155 : vector<64x4xf32>
    %c0_150 = arith.constant 0 : index
    %c0_151 = arith.constant 0 : index
    %c0_152 = arith.constant 0 : index
    %157 = vector.load %arg5[%c0_150, %c0_151, %c0_152] : memref<1x64x4xf32, #tpu.memory_space<vmem>>, vector<1x64x4xf32>
    %158 = vector.shape_cast %157 : vector<1x64x4xf32> to vector<64x4xf32>
    %159 = vector.shape_cast %156 : vector<64x4xf32> to vector<1x64x4xf32>
    tpu.vector_store %arg5[%c0_150, %c0_151, %c0_152], %159 {strides = array<i32>} : memref<1x64x4xf32, #tpu.memory_space<vmem>>, vector<1x64x4xf32>,
    return
  }
  func.func @transform_0(%arg0: i32, %arg1: i32) -> (i32, i32, i32, i32, i32) {
    %c0_i32 = arith.constant 0 : i32
    %c0_i32_0 = arith.constant 0 : i32
    %c0_i32_1 = arith.constant 0 : i32
    %c0_i32_2 = arith.constant 0 : i32
    %c0_i32_3 = arith.constant 0 : i32
    return %arg0, %c0_i32, %c0_i32_0, %c0_i32_1, %c0_i32_2 : i32, i32, i32, i32, i32
  }
  func.func @transform_1(%arg0: i32, %arg1: i32) -> (i32, i32) {
    %c0_i32 = arith.constant 0 : i32
    %c0_i32_0 = arith.constant 0 : i32
    %c0_i32_1 = arith.constant 0 : i32
    return %c0_i32, %c0_i32_0 : i32, i32
  }
  func.func @transform_2(%arg0: i32, %arg1: i32) -> (i32, i32) {
    %c0_i32 = arith.constant 0 : i32
    %c0_i32_0 = arith.constant 0 : i32
    %c0_i32_1 = arith.constant 0 : i32
    return %c0_i32, %c0_i32_0 : i32, i32
  }
  func.func @transform_3(%arg0: i32, %arg1: i32) -> (i32, i32, i32) {
    %c0_i32 = arith.constant 0 : i32
    %c0_i32_0 = arith.constant 0 : i32
    return %arg0, %arg1, %c0_i32 : i32, i32, i32
  }
}

</mosaic_0001>

<bundles_post_ra>
// kernel: tpu_custom_call.1
= control target key start
LH: loop header
LB: loop body
LE: loop exit
PB: predicated region body
PF: predicated region fallthrough
CT: control target
= control target key end

     0   :  { %s2107_s12 = smov 0   ;;  %s2109_s13 = smov 0   ;;  %s2989_s0 = inlined_call_operand.vmem [shape: f32[2,4,10,10,4], index: 0, kind: input, shape index: {}]   ;;  %s2990_s1 = inlined_call_operand.vmem [shape: f32[100,4], index: 1, kind: input, shape index: {}]   ;;  %s2991_s2 = inlined_call_operand.vmem [shape: f32[1,4], index: 2, kind: input, shape index: {}]   ;;  %s2992_s3 = inlined_call_operand.vmem [shape: f32[2,64,4], index: 3, kind: output, shape index: {}]  }
   0x1   :  { %s2111_s14 = smov 0  }
   0x2 LB: > { %s25_s15 = sadd.s32 1, %s2057_s13  ;;  %p1700_p0 = scmp.ge.s32.totalorder %s2061_s14, 1  ;;  %s2061_s14 = sphi %s2111_s14, %s13_s14   ;;  %s2057_s13 = sphi %s2109_s13, %s3000_s13   ;;  %s2053_s12 = sphi %s2107_s12, %s2999_s12  }
   0x3   : > { %p27_p1 = scmp.ge.s32.totalorder %s25_s15, 2  ;;  %p151_p2 = scmp.lt.s32.totalorder %s2061_s14, 3 }
   0x5   : > { %s3002_s15 = smov (%p27_p1, %s25_s15), 0  ;;  %p152_p3 = pnand %p1700_p0, %p151_p2 }
   0x7   : > { %155 = sbr.rel (%p152_p3) target bundleno = 741 (0x2e5), region = 32 }
   0xe   : > { %p179_p4 = scmp.lt.s32.totalorder %s2053_s12, 1  ;;  %s2063_s20 = smov 4   ;;  %vm205_vm0 = vcmask 31744   ;;  %vm256_vm1 = vcmask 64544   ;;  %vm305_vm2 = vcmask 97344   ;;  %vm354_vm3 = vcmask 130144  }
   0xf   : > { %s2064_s21 = smov 8   ;;  %s2065_s22 = smov 12   ;;  %vm403_vm4 = vcmask 162944   ;;  %vm454_vm5 = vcmask 195744   ;;  %vm505_vm6 = vcmask 228544   ;;  %vm554_vm7 = vcmask 261344  }
  0x10   : > { %s3004_s12 = smov (!%p179_p4, %s2053_s12), 1  ;;  %s2066_s23 = smov 16   ;;  %vm603_vm8 = vcmask 294144   ;;  %vm652_vm9 = vcmask 326944   ;;  %vm704_vm10 = vcmask 359744   ;;  %vm755_vm11 = vcmask 392544  }
  0x11   : > { %s1990_s16 = smul.u32 640, %s3004_s12  ;;  %s2067_s24 = smov 20   ;;  %vm804_vm12 = vcmask 425344   ;;  %vm853_vm13 = vcmask 458144   ;;  %vm902_vm14 = vcmask 490944   ;;  %vm953_vm15 = vcmask 523744  }
  0x12   : > { %s2068_s25 = smov 24   ;;  %s2069_s26 = smov 28  }
  0x13   : > { %s2131_s19 = scalar_lea.vmem %s2989_s0, %s1990_s16  ;;  %s2070_s27 = smov 32  }
  0x14   : > { %v2134_v0 = vld [vmem:[%s2131_s19 + $0xc0] sm:$0xff]  ;;  %v2139_v2 = vld [vmem:[%s2131_s19 + $0xd0] sm:$0xff]  ;;  %s2071_s28 = smov 36   ;;  %s2072_s29 = smov 40  }
  0x15   : > { %v1704_v1 = vld [vmem:[%s2131_s19 + $0xa0] sm:$0xff]  ;;  %236 = vrot.lane.b32.xlu1 %v2134_v0, %s2063_s20  ;;  %v2142_v3 = vld [vmem:[%s2131_s19 + $0xb0] sm:$0xff]  ;;  %s2073_s30 = smov 44   ;;  %s2074_s4 = smov 48  }
  0x16   : > { %232 = vrot.lane.b32.xlu0 %v1704_v1, %s2063_s20  ;;  %v2147_v4 = vld [vmem:[%s2131_s19 + $0xf0] sm:$0xff]  ;;  %v2150_v5 = vld [vmem:[%s2131_s19 + $0xe0] sm:$0xff]  ;;  %s2075_s5 = smov 52   ;;  %s2076_s6 = smov 56  }
  0x17   : > { %v2155_v6 = vld [vmem:[%s2131_s19 + $0x110] sm:$0xff]  ;;  %v2158_v7 = vld [vmem:[%s2131_s19 + $0x100] sm:$0xff]  ;;  %s2077_s7 = smov 60   ;;  %s2078_s8 = smov 64  }
  0x18   : > { %v2163_v8 = vld [vmem:[%s2131_s19 + $0x11] sm:$0xff]  ;;  %v265_v9 = vld [vmem:[%s2131_s19 + $0x1] sm:$0xff]  ;;  %s2079_s9 = smov 68   ;;  %s2080_s10 = smov 72  }
  0x19   : > { %238 = vrot.lane.b32.xlu1 %v2139_v2, %s2063_s20  ;;  %v2170_v10 = vld [vmem:[%s2131_s19 + $0x31] sm:$0xff]  ;;  %v2173_v11 = vld [vmem:[%s2131_s19 + $0x21] sm:$0xff]  ;;  %s2081_s11 = smov 76   ;;  %s2082_s16 = smov 80  }
  0x1a   : > { %234 = vrot.lane.b32.xlu0 %v2142_v3, %s2063_s20  ;;  %v2176_v12 = vld [vmem:[%s2131_s19 + $0x51] sm:$0xff]  ;;  %v2179_v13 = vld [vmem:[%s2131_s19 + $0x41] sm:$0xff]  ;;  %s2083_s17 = smov 84   ;;  %s2084_s18 = smov 88  }
  0x1b   : > { %v2186_v14 = vld [vmem:[%s2131_s19 + $0x20] sm:$0xff]  ;;  %v2193_v16 = vld [vmem:[%s2131_s19 + $0x50] sm:$0xff] }
  0x1c   : > { %v197_v15 = vld [vmem:[%s2131_s19] sm:$0xff]  ;;  %208 = vst.msk [vmem:[#allocation2 + $0x10] sm:$0xff] %vm205_vm0, %v2186_v14  ;;  %2995 = vst [vmem:[#allocation3_spill] sm:$0xff] %v2193_v16  ;;  %v2196_v17 = vld [vmem:[%s2131_s19 + $0x10] sm:$0xff] }
  0x1d   : > { %242 = vrot.lane.b32.xlu1 %v2147_v4, %s2063_s20  ;;  %206 = vst.msk [vmem:[#allocation2] sm:$0xff] %vm205_vm0, %v197_v15  ;;  %v2199_v18 = vld [vmem:[%s2131_s19 + $0x30] sm:$0xff]  ;;  %207 = vst.msk [vmem:[#allocation2 + $0x8] sm:$0xff] %vm205_vm0, %v2196_v17  ;;  %v2208_v19 = vld [vmem:[%s2131_s19 + $0x40] sm:$0xff] }
  0x1e   : > { %240 = vrot.lane.b32.xlu0 %v2150_v5, %s2063_s20  ;;  %209 = vst.msk [vmem:[#allocation2 + $0x18] sm:$0xff] %vm205_vm0, %v2199_v18  ;;  %211 = vst.msk [vmem:[#allocation2 + $0x28] sm:$0xff] %vm205_vm0, %v2193_v16  ;;  %v2213_v20 = vld [vmem:[%s2131_s19 + $0x70] sm:$0xff]  ;;  %v2222_v21 = vld [vmem:[%s2131_s19 + $0x60] sm:$0xff] }
  0x1f   : > { %210 = vst.msk [vmem:[#allocation2 + $0x20] sm:$0xff] %vm205_vm0, %v2208_v19  ;;  %213 = vst.msk [vmem:[#allocation2 + $0x38] sm:$0xff] %vm205_vm0, %v2213_v20  ;;  %v2225_v22 = vld [vmem:[%s2131_s19 + $0x71] sm:$0xff]  ;;  %v2228_v23 = vld [vmem:[%s2131_s19 + $0x61] sm:$0xff] }
  0x20   : > { %212 = vst.msk [vmem:[#allocation2 + $0x30] sm:$0xff] %vm205_vm0, %v2222_v21  ;;  %v2237_v24 = vld [vmem:[%s2131_s19 + $0xb1] sm:$0xff]  ;;  %v1712_v25 = vld [vmem:[%s2131_s19 + $0xa1] sm:$0xff] }
  0x21   : > { %246 = vrot.lane.b32.xlu1 %v2155_v6, %s2063_s20  ;;  %v2242_v26 = vld [vmem:[%s2131_s19 + $0xd1] sm:$0xff]  ;;  %v2245_v27 = vld [vmem:[%s2131_s19 + $0xc1] sm:$0xff] }
  0x22   : > { %244 = vrot.lane.b32.xlu0 %v2158_v7, %s2063_s20  ;;  %v2250_v28 = vld [vmem:[%s2131_s19 + $0xf1] sm:$0xff]  ;;  %v2253_v29 = vld [vmem:[%s2131_s19 + $0xe1] sm:$0xff] }
  0x23   : > { %v2258_v30 = vld [vmem:[%s2131_s19 + $0x111] sm:$0xff]  ;;  %v2261_v31 = vld [vmem:[%s2131_s19 + $0x101] sm:$0xff] }
  0x24   : > { %v2266_v32 = vld [vmem:[%s2131_s19 + $0x12] sm:$0xff]  ;;  %v363_v33 = vld [vmem:[%s2131_s19 + $0x2] sm:$0xff] }
  0x25   : > { %283 = vrot.lane.b32.xlu1 %v2163_v8, %s2064_s21  ;;  %v2271_v34 = vld [vmem:[%s2131_s19 + $0x32] sm:$0xff]  ;;  %v2274_v35 = vld [vmem:[%s2131_s19 + $0x22] sm:$0xff] }
  0x26   : > { %281 = vrot.lane.b32.xlu0 %v265_v9, %s2064_s21  ;;  %v2279_v36 = vld [vmem:[%s2131_s19 + $0x52] sm:$0xff]  ;;  %v2282_v37 = vld [vmem:[%s2131_s19 + $0x42] sm:$0xff] }
  0x27   : > { %v2287_v38 = vld [vmem:[%s2131_s19 + $0x72] sm:$0xff]  ;;  %v2290_v39 = vld [vmem:[%s2131_s19 + $0x62] sm:$0xff] }
  0x28   : > { %v2295_v40 = vld [vmem:[%s2131_s19 + $0x150] sm:$0xff]  ;;  %v1720_v41 = vld [vmem:[%s2131_s19 + $0x140] sm:$0xff] }
  0x29   : > { %287 = vrot.lane.b32.xlu1 %v2170_v10, %s2064_s21  ;;  %v2300_v42 = vld [vmem:[%s2131_s19 + $0x170] sm:$0xff]  ;;  %v2303_v43 = vld [vmem:[%s2131_s19 + $0x160] sm:$0xff] }
  0x2a   : > { %285 = vrot.lane.b32.xlu0 %v2173_v11, %s2064_s21  ;;  %v2308_v44 = vld [vmem:[%s2131_s19 + $0x190] sm:$0xff]  ;;  %v2311_v45 = vld [vmem:[%s2131_s19 + $0x180] sm:$0xff] }
  0x2b   : > { %v2316_v46 = vld [vmem:[%s2131_s19 + $0x1b0] sm:$0xff]  ;;  %v2319_v47 = vld [vmem:[%s2131_s19 + $0x1a0] sm:$0xff] }
  0x2c   : > { %v2324_v48 = vld [vmem:[%s2131_s19 + $0x220] sm:$0xff]  ;;  %v2331_v50 = vld [vmem:[%s2131_s19 + $0x230] sm:$0xff] }
  0x2d   : > { %291 = vrot.lane.b32.xlu1 %v2176_v12, %s2064_s21  ;;  %v1728_v49 = vld [vmem:[%s2131_s19 + $0x1e0] sm:$0xff]  ;;  %v2334_v51 = vld [vmem:[%s2131_s19 + $0x1f0] sm:$0xff] }
  0x2e   : > { %289 = vrot.lane.b32.xlu0 %v2179_v13, %s2064_s21  ;;  %v2341_v52 = vld [vmem:[%s2131_s19 + $0x181] sm:$0xff]  ;;  %v2348_v54 = vld [vmem:[%s2131_s19 + $0x191] sm:$0xff] }
  0x2f   : > { %v1736_v53 = vld [vmem:[%s2131_s19 + $0x141] sm:$0xff]  ;;  %v2351_v55 = vld [vmem:[%s2131_s19 + $0x151] sm:$0xff] }
  0x30   : > { %v2358_v56 = vld [vmem:[%s2131_s19 + $0x221] sm:$0xff]  ;;  %v2365_v58 = vld [vmem:[%s2131_s19 + $0x231] sm:$0xff] }
  0x31   : > { %295 = vrot.lane.b32.xlu1 %v2225_v22, %s2064_s21  ;;  %v1744_v57 = vld [vmem:[%s2131_s19 + $0x1e1] sm:$0xff]  ;;  %v2368_v59 = vld [vmem:[%s2131_s19 + $0x1f1] sm:$0xff] }
  0x32   : > { %293 = vrot.lane.b32.xlu0 %v2228_v23, %s2064_s21  ;;  %v2375_v60 = vld [vmem:[%s2131_s19 + $0x182] sm:$0xff]  ;;  %v2392_v1 = vld [vmem:[%s2131_s19 + $0x192] sm:$0xff] }
  0x33   : > { %2996 = vst [vmem:[#allocation4_spill] sm:$0xff] %v2375_v60  ;;  %v1752_v61 = vld [vmem:[%s2131_s19 + $0x142] sm:$0xff]  ;;  %v2395_v9 = vld [vmem:[%s2131_s19 + $0x152] sm:$0xff] }
  0x34   : > { %v2382_v62 = vld [vmem:[%s2131_s19 + $0x240] sm:$0xff] }
  0x35   : > { %332 = vrot.lane.b32.xlu1 %v2237_v24, %s2065_s22  ;;  %v2385_v63 = vld [vmem:[%s2131_s19 + $0x200] sm:$0xff] }
  0x36   : > { %330 = vrot.lane.b32.xlu0 %v1712_v25, %s2065_s22 }
  0x39   : > { %336 = vrot.lane.b32.xlu1 %v2242_v26, %s2065_s22 }
  0x3a   : > { %334 = vrot.lane.b32.xlu0 %v2245_v27, %s2065_s22 }
  0x3d   : > { %340 = vrot.lane.b32.xlu1 %v2250_v28, %s2065_s22 }
  0x3e   : > { %338 = vrot.lane.b32.xlu0 %v2253_v29, %s2065_s22 }
  0x41   : > { %344 = vrot.lane.b32.xlu1 %v2258_v30, %s2065_s22 }
  0x42   : > { %342 = vrot.lane.b32.xlu0 %v2261_v31, %s2065_s22 }
  0x45   : > { %381 = vrot.lane.b32.xlu1 %v2266_v32, %s2066_s23 }
  0x46   : > { %379 = vrot.lane.b32.xlu0 %v363_v33, %s2066_s23  ;;  %v2408_v33 = vld [vmem:[%s2131_s19 + $0x250] sm:$0xff] }
  0x49   : > { %385 = vrot.lane.b32.xlu1 %v2271_v34, %s2066_s23 }
  0x4a   : > { %383 = vrot.lane.b32.xlu0 %v2274_v35, %s2066_s23 }
  0x4d   : > { %389 = vrot.lane.b32.xlu1 %v2279_v36, %s2066_s23 }
  0x4e   : > { %387 = vrot.lane.b32.xlu0 %v2282_v37, %s2066_s23 }
  0x51   : > { %393 = vrot.lane.b32.xlu1 %v2287_v38, %s2066_s23 }
  0x52   : > { %391 = vrot.lane.b32.xlu0 %v2290_v39, %s2066_s23 }
  0x55   : > { %432 = vrot.lane.b32.xlu1 %v2295_v40, %s2067_s24 }
  0x56   : > { %430 = vrot.lane.b32.xlu0 %v1720_v41, %s2067_s24  ;;  %v2411_v41 = vld [vmem:[%s2131_s19 + $0x210] sm:$0xff] }
  0x59   : > { %436 = vrot.lane.b32.xlu1 %v2300_v42, %s2067_s24 }
  0x5a   : > { %434 = vrot.lane.b32.xlu0 %v2303_v43, %s2067_s24 }
  0x5d   : > { %440 = vrot.lane.b32.xlu1 %v2308_v44, %s2067_s24 }
  0x5e   : > { %438 = vrot.lane.b32.xlu0 %v2311_v45, %s2067_s24 }
  0x61   : > { %444 = vrot.lane.b32.xlu1 %v2316_v46, %s2067_s24 }
  0x62   : > { %442 = vrot.lane.b32.xlu0 %v2319_v47, %s2067_s24 }
  0x65   : > { %489 = vrot.lane.b32.xlu1 %v2324_v48, %s2068_s25 }
  0x66   : > { %481 = vrot.lane.b32.xlu0 %v1728_v49, %s2068_s25 }
  0x69   : > { %491 = vrot.lane.b32.xlu1 %v2331_v50, %s2068_s25 }
  0x6a   : > { %483 = vrot.lane.b32.xlu0 %v2334_v51, %s2068_s25 }
  0x6d   : > { %538 = vrot.lane.b32.xlu1 %v2341_v52, %s2069_s26 }
  0x6e   : > { %530 = vrot.lane.b32.xlu0 %v1736_v53, %s2069_s26 }
  0x71   : > { %540 = vrot.lane.b32.xlu1 %v2348_v54, %s2069_s26 }
  0x72   : > { %532 = vrot.lane.b32.xlu0 %v2351_v55, %s2069_s26 }
  0x75   : > { %587 = vrot.lane.b32.xlu1 %v2358_v56, %s2070_s27 }
  0x76   : > { %579 = vrot.lane.b32.xlu0 %v1744_v57, %s2070_s27  ;;  %v2420_v57 = vld [vmem:[%s2131_s19 + $0x1a1] sm:$0xff] }
  0x79   : > { %589 = vrot.lane.b32.xlu1 %v2365_v58, %s2070_s27 }
  0x7a   : > { %581 = vrot.lane.b32.xlu0 %v2368_v59, %s2070_s27 }
  0x7d   : > { %636 = vrot.lane.b32.xlu1 %v2375_v60, %s2071_s28 }
  0x7e   : > { %628 = vrot.lane.b32.xlu0 %v1752_v61, %s2071_s28  ;;  %v2423_v61 = vld [vmem:[%s2131_s19 + $0x161] sm:$0xff] }
  0x81   : > { %493 = vrot.lane.b32.xlu1 %v2382_v62, %s2068_s25 }
  0x82   : > { %485 = vrot.lane.b32.xlu0 %v2385_v63, %s2068_s25 }
  0x85   : > { %638 = vrot.lane.b32.xlu1 %v2392_v1, %s2071_s28 }
  0x86   : > { %630 = vrot.lane.b32.xlu0 %v2395_v9, %s2071_s28 }
  0x87   : > { %v237_v15 = vpop.permute.xlu1 %236 }
  0x88   : > { %v233_v25 = vpop.permute.xlu0 %232  ;;  %259 = vst.msk [vmem:[#allocation2 + $0x10] sm:$0xff] %vm256_vm1, %v237_v15 }
  0x89   : > { %257 = vst.msk [vmem:[#allocation2] sm:$0xff] %vm256_vm1, %v233_v25  ;;  %688 = vrot.lane.b32.xlu1 %v2193_v16, %s2072_s29 }
  0x8a   : > { %680 = vrot.lane.b32.xlu0 %v2196_v17, %s2072_s29 }
  0x8b   : > { %v239_v49 = vpop.permute.xlu1 %238 }
  0x8c   : > { %v235_v53 = vpop.permute.xlu0 %234  ;;  %260 = vst.msk [vmem:[#allocation2 + $0x18] sm:$0xff] %vm256_vm1, %v239_v49 }
  0x8d   : > { %258 = vst.msk [vmem:[#allocation2 + $0x8] sm:$0xff] %vm256_vm1, %v235_v53  ;;  %495 = vrot.lane.b32.xlu1 %v2408_v33, %s2068_s25 }
  0x8e   : > { %487 = vrot.lane.b32.xlu0 %v2411_v41, %s2068_s25 }
  0x8f   : > { %v243_v17 = vpop.permute.xlu1 %242 }
  0x90   : > { %v241_v15 = vpop.permute.xlu0 %240  ;;  %262 = vst.msk [vmem:[#allocation2 + $0x28] sm:$0xff] %vm256_vm1, %v243_v17 }
  0x91   : > { %261 = vst.msk [vmem:[#allocation2 + $0x20] sm:$0xff] %vm256_vm1, %v241_v15  ;;  %542 = vrot.lane.b32.xlu1 %v2420_v57, %s2069_s26  ;;  %v2444_v15 = vld [vmem:[%s2131_s19 + $0x1b1] sm:$0xff] }
  0x92   : > { %534 = vrot.lane.b32.xlu0 %v2423_v61, %s2069_s26 }
  0x93   : > { %v247_v25 = vpop.permute.xlu1 %246 }
  0x94   : > { %v245_v49 = vpop.permute.xlu0 %244  ;;  %264 = vst.msk [vmem:[#allocation2 + $0x38] sm:$0xff] %vm256_vm1, %v247_v25  ;;  %v2447_v25 = vld [vmem:[%s2131_s19 + $0x171] sm:$0xff] }
  0x95   : > { %263 = vst.msk [vmem:[#allocation2 + $0x30] sm:$0xff] %vm256_vm1, %v245_v49  ;;  %690 = vrot.lane.b32.xlu1 %v2222_v21, %s2072_s29  ;;  %vm1004_vm1 = vcmask 556544  }
  0x96   : > { %682 = vrot.lane.b32.xlu0 %v2186_v14, %s2072_s29 }
  0x97   : > { %v284_v53 = vpop.permute.xlu1 %283 }
  0x98   : > { %v282_v17 = vpop.permute.xlu0 %281  ;;  %307 = vst.msk [vmem:[#allocation2 + $0x8] sm:$0xff] %vm305_vm2, %v284_v53  ;;  %v2459_v53 = vld [vmem:[%s2131_s19 + $0x201] sm:$0xff] }
  0x99   : > { %306 = vst.msk [vmem:[#allocation2] sm:$0xff] %vm305_vm2, %v282_v17  ;;  %739 = vrot.lane.b32.xlu1 %v2147_v4, %s2073_s30  ;;  %v2456_v4 = vld [vmem:[%s2131_s19 + $0x241] sm:$0xff] }
  0x9a   : > { %731 = vrot.lane.b32.xlu0 %v2142_v3, %s2073_s30 }
  0x9b   : > { %v288_v49 = vpop.permute.xlu1 %287 }
  0x9c   : > { %v286_v16 = vpop.permute.xlu0 %285  ;;  %309 = vst.msk [vmem:[#allocation2 + $0x18] sm:$0xff] %vm305_vm2, %v288_v49 }
  0x9d   : > { %308 = vst.msk [vmem:[#allocation2 + $0x10] sm:$0xff] %vm305_vm2, %v286_v16  ;;  %544 = vrot.lane.b32.xlu1 %v2444_v15, %s2069_s26 }
  0x9e   : > { %536 = vrot.lane.b32.xlu0 %v2447_v25, %s2069_s26  ;;  %s2086_s26 = smov 96  }
  0x9f   : > { %v292_v3 = vpop.permute.xlu1 %291 }
  0xa0   : > { %v290_v17 = vpop.permute.xlu0 %289  ;;  %311 = vst.msk [vmem:[#allocation2 + $0x28] sm:$0xff] %vm305_vm2, %v292_v3 }
  0xa1   : > { %310 = vst.msk [vmem:[#allocation2 + $0x20] sm:$0xff] %vm305_vm2, %v290_v17  ;;  %591 = vrot.lane.b32.xlu1 %v2456_v4, %s2070_s27 }
  0xa2   : > { %583 = vrot.lane.b32.xlu0 %v2459_v53, %s2070_s27 }
  0xa3   : > { %v296_v16 = vpop.permute.xlu1 %295 }
  0xa4   : > { %v294_v49 = vpop.permute.xlu0 %293  ;;  %313 = vst.msk [vmem:[#allocation2 + $0x38] sm:$0xff] %vm305_vm2, %v296_v16  ;;  %v2480_v16 = vld [vmem:[%s2131_s19 + $0x251] sm:$0xff] }
  0xa5   : > { %312 = vst.msk [vmem:[#allocation2 + $0x30] sm:$0xff] %vm305_vm2, %v294_v49  ;;  %741 = vrot.lane.b32.xlu1 %v2158_v7, %s2073_s30  ;;  %v2483_v49 = vld [vmem:[%s2131_s19 + $0x211] sm:$0xff]  ;;  %vm1053_vm2 = vcmask 589344  }
  0xa6   : > { %733 = vrot.lane.b32.xlu0 %v2134_v0, %s2073_s30 }
  0xa7   : > { %v333_v3 = vpop.permute.xlu1 %332 }
  0xa8   : > { %v331_v17 = vpop.permute.xlu0 %330  ;;  %356 = vst.msk [vmem:[#allocation2 + $0x8] sm:$0xff] %vm354_vm3, %v333_v3  ;;  %v2495_v3 = vld [vmem:[%s2131_s19 + $0x162] sm:$0xff] }
  0xa9   : > { %355 = vst.msk [vmem:[#allocation2] sm:$0xff] %vm354_vm3, %v331_v17  ;;  %788 = vrot.lane.b32.xlu1 %v2176_v12, %s2074_s4  ;;  %v2492_v12 = vld [vmem:[%s2131_s19 + $0x1a2] sm:$0xff] }
  0xaa   : > { %780 = vrot.lane.b32.xlu0 %v2163_v8, %s2074_s4 }
  0xab   : > { %v337_v0 = vpop.permute.xlu1 %336 }
  0xac   : > { %v335_v60 = vpop.permute.xlu0 %334  ;;  %358 = vst.msk [vmem:[#allocation2 + $0x18] sm:$0xff] %vm354_vm3, %v337_v0 }
  0xad   : > { %357 = vst.msk [vmem:[#allocation2 + $0x10] sm:$0xff] %vm354_vm3, %v335_v60  ;;  %593 = vrot.lane.b32.xlu1 %v2480_v16, %s2070_s27 }
  0xae   : > { %585 = vrot.lane.b32.xlu0 %v2483_v49, %s2070_s27 }
  0xaf   : > { %v341_v8 = vpop.permute.xlu1 %340 }
  0xb0   : > { %v339_v17 = vpop.permute.xlu0 %338  ;;  %360 = vst.msk [vmem:[#allocation2 + $0x28] sm:$0xff] %vm354_vm3, %v341_v8 }
  0xb1   : > { %359 = vst.msk [vmem:[#allocation2 + $0x20] sm:$0xff] %vm354_vm3, %v339_v17  ;;  %640 = vrot.lane.b32.xlu1 %v2492_v12, %s2071_s28 }
  0xb2   : > { %632 = vrot.lane.b32.xlu0 %v2495_v3, %s2071_s28 }
  0xb3   : > { %v345_v60 = vpop.permute.xlu1 %344 }
  0xb4   : > { %v343_v0 = vpop.permute.xlu0 %342  ;;  %362 = vst.msk [vmem:[#allocation2 + $0x38] sm:$0xff] %vm354_vm3, %v345_v60  ;;  %v2516_v60 = vld [vmem:[%s2131_s19 + $0x1b2] sm:$0xff] }
  0xb5   : > { %361 = vst.msk [vmem:[#allocation2 + $0x30] sm:$0xff] %vm354_vm3, %v343_v0  ;;  %790 = vrot.lane.b32.xlu1 %v2228_v23, %s2074_s4  ;;  %v2519_v23 = vld [vmem:[%s2131_s19 + $0x172] sm:$0xff]  ;;  %vm1463_vm3 = vcmask 1043456  }
  0xb6   : > { %782 = vrot.lane.b32.xlu0 %v2173_v11, %s2074_s4 }
  0xb7   : > { %v382_v8 = vpop.permute.xlu1 %381 }
  0xb8   : > { %v380_v17 = vpop.permute.xlu0 %379  ;;  %405 = vst.msk [vmem:[#allocation2 + $0x8] sm:$0xff] %vm403_vm4, %v382_v8 }
  0xb9   : > { %404 = vst.msk [vmem:[#allocation2] sm:$0xff] %vm403_vm4, %v380_v17  ;;  %837 = vrot.lane.b32.xlu1 %v2250_v28, %s2075_s5 }
  0xba   : > { %829 = vrot.lane.b32.xlu0 %v2237_v24, %s2075_s5 }
  0xbb   : > { %v386_v0 = vpop.permute.xlu1 %385 }
  0xbc   : > { %v384_v11 = vpop.permute.xlu0 %383  ;;  %407 = vst.msk [vmem:[#allocation2 + $0x18] sm:$0xff] %vm403_vm4, %v386_v0 }
  0xbd   : > { %406 = vst.msk [vmem:[#allocation2 + $0x10] sm:$0xff] %vm403_vm4, %v384_v11  ;;  %642 = vrot.lane.b32.xlu1 %v2516_v60, %s2071_s28 }
  0xbe   : > { %634 = vrot.lane.b32.xlu0 %v2519_v23, %s2071_s28  ;;  %s2085_s28 = smov 92  }
  0xbf   : > { %v390_v28 = vpop.permute.xlu1 %389 }
  0xc0   : > { %v388_v8 = vpop.permute.xlu0 %387  ;;  %409 = vst.msk [vmem:[#allocation2 + $0x28] sm:$0xff] %vm403_vm4, %v390_v28  ;;  %v2546_v28 = vld [vmem:[%s2131_s19 + $0x80] sm:$0xff] }
  0xc1   : > { %408 = vst.msk [vmem:[#allocation2 + $0x20] sm:$0xff] %vm403_vm4, %v388_v8  ;;  %692 = vrot.lane.b32.xlu1 %v2213_v20, %s2072_s29 }
  0xc2   : > { %684 = vrot.lane.b32.xlu0 %v2199_v18, %s2072_s29 }
  0xc3   : > { %v394_v24 = vpop.permute.xlu1 %393 }
  0xc4   : > { %v392_v17 = vpop.permute.xlu0 %391  ;;  %411 = vst.msk [vmem:[#allocation2 + $0x38] sm:$0xff] %vm403_vm4, %v394_v24 }
  0xc5   : > { %410 = vst.msk [vmem:[#allocation2 + $0x30] sm:$0xff] %vm403_vm4, %v392_v17  ;;  %839 = vrot.lane.b32.xlu1 %v2261_v31, %s2075_s5  ;;  %vm1102_vm4 = vcmask 622144  }
  0xc6   : > { %831 = vrot.lane.b32.xlu0 %v2245_v27, %s2075_s5 }
  0xc7   : > { %v433_v0 = vpop.permute.xlu1 %432 }
  0xc8   : > { %v431_v11 = vpop.permute.xlu0 %430  ;;  %456 = vst.msk [vmem:[#allocation2 + $0x8] sm:$0xff] %vm454_vm5, %v433_v0 }
  0xc9   : > { %455 = vst.msk [vmem:[#allocation2] sm:$0xff] %vm454_vm5, %v431_v11  ;;  %886 = vrot.lane.b32.xlu1 %v2279_v36, %s2076_s6 }
  0xca   : > { %878 = vrot.lane.b32.xlu0 %v2266_v32, %s2076_s6 }
  0xcb   : > { %v437_v31 = vpop.permute.xlu1 %436 }
  0xcc   : > { %v435_v8 = vpop.permute.xlu0 %434  ;;  %458 = vst.msk [vmem:[#allocation2 + $0x18] sm:$0xff] %vm454_vm5, %v437_v31 }
  0xcd   : > { %457 = vst.msk [vmem:[#allocation2 + $0x10] sm:$0xff] %vm454_vm5, %v435_v8  ;;  %694 = vrot.lane.b32.xlu1 %v2546_v28, %s2072_s29 }
  0xce   : > { %686 = vrot.lane.b32.xlu0 %v2208_v19, %s2072_s29 }
  0xcf   : > { %v441_v27 = vpop.permute.xlu1 %440 }
  0xd0   : > { %v439_v24 = vpop.permute.xlu0 %438  ;;  %460 = vst.msk [vmem:[#allocation2 + $0x28] sm:$0xff] %vm454_vm5, %v441_v27 }
  0xd1   : > { %459 = vst.msk [vmem:[#allocation2 + $0x20] sm:$0xff] %vm454_vm5, %v439_v24  ;;  %743 = vrot.lane.b32.xlu1 %v2155_v6, %s2073_s30 }
  0xd2   : > { %735 = vrot.lane.b32.xlu0 %v2139_v2, %s2073_s30  ;;  %v2573_v2 = vld [vmem:[%s2131_s19 + $0x120] sm:$0xff] }
  0xd3   : > { %v445_v32 = vpop.permute.xlu1 %444 }
  0xd4   : > { %v443_v36 = vpop.permute.xlu0 %442  ;;  %462 = vst.msk [vmem:[#allocation2 + $0x38] sm:$0xff] %vm454_vm5, %v445_v32 }
  0xd5   : > { %461 = vst.msk [vmem:[#allocation2 + $0x30] sm:$0xff] %vm454_vm5, %v443_v36  ;;  %888 = vrot.lane.b32.xlu1 %v2290_v39, %s2076_s6  ;;  %vm1151_vm5 = vcmask 654944  }
  0xd6   : > { %880 = vrot.lane.b32.xlu0 %v2274_v35, %s2076_s6 }
  0xd7   : > { %v490_v17 = vpop.permute.xlu1 %489 }
  0xd8   : > { %v482_v0 = vpop.permute.xlu0 %481  ;;  %510 = vst.msk [vmem:[#allocation2 + $0x20] sm:$0xff] %vm505_vm6, %v490_v17 }
  0xd9   : > { %506 = vst.msk [vmem:[#allocation2] sm:$0xff] %vm505_vm6, %v482_v0  ;;  %937 = vrot.lane.b32.xlu1 %v2308_v44, %s2077_s7 }
  0xda   : > { %929 = vrot.lane.b32.xlu0 %v2295_v40, %s2077_s7 }
  0xdb   : > { %v492_v6 = vpop.permute.xlu1 %491 }
  0xdc   : > { %v484_v39 = vpop.permute.xlu0 %483  ;;  %511 = vst.msk [vmem:[#allocation2 + $0x28] sm:$0xff] %vm505_vm6, %v492_v6 }
  0xdd   : > { %507 = vst.msk [vmem:[#allocation2 + $0x8] sm:$0xff] %vm505_vm6, %v484_v39  ;;  %745 = vrot.lane.b32.xlu1 %v2573_v2, %s2073_s30 }
  0xde   : > { %737 = vrot.lane.b32.xlu0 %v2150_v5, %s2073_s30 }
  0xdf   : > { %v539_v35 = vpop.permute.xlu1 %538 }
  0xe0   : > { %v531_v44 = vpop.permute.xlu0 %530  ;;  %559 = vst.msk [vmem:[#allocation2 + $0x20] sm:$0xff] %vm554_vm7, %v539_v35 }
  0xe1   : > { %555 = vst.msk [vmem:[#allocation2] sm:$0xff] %vm554_vm7, %v531_v44  ;;  %792 = vrot.lane.b32.xlu1 %v2225_v22, %s2074_s4 }
  0xe2   : > { %784 = vrot.lane.b32.xlu0 %v2170_v10, %s2074_s4  ;;  %v2600_v10 = vld [vmem:[%s2131_s19 + $0x81] sm:$0xff] }
  0xe3   : > { %v541_v40 = vpop.permute.xlu1 %540 }
  0xe4   : > { %v533_v11 = vpop.permute.xlu0 %532  ;;  %560 = vst.msk [vmem:[#allocation2 + $0x28] sm:$0xff] %vm554_vm7, %v541_v40  ;;  %v1853_v40 = vld [vmem:[%s2131_s19 + $0x110] sm:$0xff] }
  0xe5   : > { %556 = vst.msk [vmem:[#allocation2 + $0x8] sm:$0xff] %vm554_vm7, %v533_v11  ;;  %939 = vrot.lane.b32.xlu1 %v2319_v47, %s2077_s7  ;;  %v1849_v11 = vld [vmem:[%s2131_s19 + $0xd0] sm:$0xff] }
  0xe6   : > { %931 = vrot.lane.b32.xlu0 %v2303_v43, %s2077_s7 }
  0xe7   : > { %v588_v5 = vpop.permute.xlu1 %587 }
  0xe8   : > { %v580_v31 = vpop.permute.xlu0 %579  ;;  %608 = vst.msk [vmem:[#allocation2 + $0x20] sm:$0xff] %vm603_vm8, %v588_v5 }
  0xe9   : > { %604 = vst.msk [vmem:[#allocation2] sm:$0xff] %vm603_vm8, %v580_v31  ;;  %988 = vrot.lane.b32.xlu1 %v2331_v50, %s2078_s8 }
  0xea   : > { %980 = vrot.lane.b32.xlu0 %v2334_v51, %s2078_s8 }
  0xeb   : > { %v590_v22 = vpop.permute.xlu1 %589 }
  0xec   : > { %v582_v47 = vpop.permute.xlu0 %581  ;;  %609 = vst.msk [vmem:[#allocation2 + $0x28] sm:$0xff] %vm603_vm8, %v590_v22  ;;  %v1856_v22 = vld [vmem:[%s2131_s19 + $0x21] sm:$0xff] }
  0xed   : > { %605 = vst.msk [vmem:[#allocation2 + $0x8] sm:$0xff] %vm603_vm8, %v582_v47  ;;  %794 = vrot.lane.b32.xlu1 %v2600_v10, %s2074_s4 }
  0xee   : > { %786 = vrot.lane.b32.xlu0 %v2179_v13, %s2074_s4 }
  0xef   : > { %v637_v43 = vpop.permute.xlu1 %636 }
  0xf0   : > { %v629_v50 = vpop.permute.xlu0 %628  ;;  %657 = vst.msk [vmem:[#allocation2 + $0x20] sm:$0xff] %vm652_vm9, %v637_v43 }
  0xf1   : > { %653 = vst.msk [vmem:[#allocation2] sm:$0xff] %vm652_vm9, %v629_v50  ;;  %841 = vrot.lane.b32.xlu1 %v2258_v30, %s2075_s5 }
  0xf2   : > { %833 = vrot.lane.b32.xlu0 %v2242_v26, %s2075_s5  ;;  %v2627_v26 = vld [vmem:[%s2131_s19 + $0x121] sm:$0xff] }
  0xf3   : > { %v494_v51 = vpop.permute.xlu1 %493 }
  0xf4   : > { %v486_v8 = vpop.permute.xlu0 %485  ;;  %512 = vst.msk [vmem:[#allocation2 + $0x30] sm:$0xff] %vm505_vm6, %v494_v51 }
  0xf5   : > { %508 = vst.msk [vmem:[#allocation2 + $0x10] sm:$0xff] %vm505_vm6, %v486_v8  ;;  %990 = vrot.lane.b32.xlu1 %v2382_v62, %s2078_s8 }
  0xf6   : > { %982 = vrot.lane.b32.xlu0 %v2385_v63, %s2078_s8 }
  0xf7   : > { %v639_v13 = vpop.permute.xlu1 %638 }
  0xf8   : > { %v631_v27 = vpop.permute.xlu0 %630  ;;  %658 = vst.msk [vmem:[#allocation2 + $0x28] sm:$0xff] %vm652_vm9, %v639_v13  ;;  %v1861_v13 = vld [vmem:[%s2131_s19 + $0x71] sm:$0xff] }
  0xf9   : > { %654 = vst.msk [vmem:[#allocation2 + $0x8] sm:$0xff] %vm652_vm9, %v631_v27  ;;  %1037 = vrot.lane.b32.xlu1 %v2348_v54, %s2079_s9  ;;  %v1857_v27 = vld [vmem:[%s2131_s19 + $0x31] sm:$0xff] }
  0xfa   : > { %1029 = vrot.lane.b32.xlu0 %v2351_v55, %s2079_s9 }
  0xfb   : > { %v689_v30 = vpop.permute.xlu1 %688 }
  0xfc   : > { %v681_v62 = vpop.permute.xlu0 %680  ;;  %709 = vst.msk [vmem:[#allocation2 + $0x20] sm:$0xff] %vm704_vm10, %v689_v30 }
  0xfd   : > { %705 = vst.msk [vmem:[#allocation2] sm:$0xff] %vm704_vm10, %v681_v62  ;;  %843 = vrot.lane.b32.xlu1 %v2627_v26, %s2075_s5 }
  0xfe   : > { %835 = vrot.lane.b32.xlu0 %v2253_v29, %s2075_s5 }
  0xff   : > { %v496_v63 = vpop.permute.xlu1 %495 }
 0x100   : > { %v488_v54 = vpop.permute.xlu0 %487  ;;  %513 = vst.msk [vmem:[#allocation2 + $0x38] sm:$0xff] %vm505_vm6, %v496_v63  ;;  %v1419_v63 = vld [vmem:[%s2990_s1 + $0x8] sm:$0xff] }
 0x101   : > { %509 = vst.msk [vmem:[#allocation2 + $0x18] sm:$0xff] %vm505_vm6, %v488_v54  ;;  %890 = vrot.lane.b32.xlu1 %v2287_v38, %s2076_s6  ;;  %v1864_v54 = vld [vmem:[%s2131_s19 + $0xc1] sm:$0xff]  ;;  %vm1203_vm6 = vcmask 687744  }
 0x102   : > { %882 = vrot.lane.b32.xlu0 %v2271_v34, %s2076_s6  ;;  %v2654_v34 = vld [vmem:[%s2131_s19 + $0x82] sm:$0xff] }
 0x103   : > { %v543_v55 = vpop.permute.xlu1 %542 }
 0x104   : > { %v535_v24 = vpop.permute.xlu0 %534  ;;  %561 = vst.msk [vmem:[#allocation2 + $0x30] sm:$0xff] %vm554_vm7, %v543_v55 }
 0x105   : > { %557 = vst.msk [vmem:[#allocation2 + $0x10] sm:$0xff] %vm554_vm7, %v535_v24  ;;  %1039 = vrot.lane.b32.xlu1 %v2420_v57, %s2079_s9 }
 0x106   : > { %1031 = vrot.lane.b32.xlu0 %v2423_v61, %s2079_s9 }
 0x107   : > { %v691_v29 = vpop.permute.xlu1 %690 }
 0x108   : > { %v683_v32 = vpop.permute.xlu0 %682  ;;  %710 = vst.msk [vmem:[#allocation2 + $0x28] sm:$0xff] %vm704_vm10, %v691_v29  ;;  %v1420_v29 = vld [vmem:[%s2990_s1 + $0x10] sm:$0xff] }
 0x109   : > { %706 = vst.msk [vmem:[#allocation2 + $0x8] sm:$0xff] %vm704_vm10, %v683_v32  ;;  %1086 = vrot.lane.b32.xlu1 %v2365_v58, %s2080_s10  ;;  %v1421_v32 = vld [vmem:[%s2990_s1 + $0x18] sm:$0xff] }
 0x10a   : > { %1078 = vrot.lane.b32.xlu0 %v2368_v59, %s2080_s10 }
 0x10b   : > { %v740_v38 = vpop.permute.xlu1 %739 }
 0x10c   : > { %v732_v57 = vpop.permute.xlu0 %731  ;;  %760 = vst.msk [vmem:[#allocation2 + $0x20] sm:$0xff] %vm755_vm11, %v740_v38  ;;  %v1956_v38 = vpack.c.bf16 %v1421_v32, %v1420_v29  ;;  %v1875_v29 = vld [vmem:[%s2131_s19 + $0x52] sm:$0xff] }
 0x10d   : > { %756 = vst.msk [vmem:[#allocation2] sm:$0xff] %vm755_vm11, %v732_v57  ;;  %892 = vrot.lane.b32.xlu1 %v2654_v34, %s2076_s6  ;;  %v1839_v57 = vld [vmem:[%s2131_s19 + $0x1c2] sm:$0xff] }
 0x10e   : > { %884 = vrot.lane.b32.xlu0 %v2282_v37, %s2076_s6 }
 0x10f   : > { %v545_v61 = vpop.permute.xlu1 %544 }
 0x110   : > { %v537_v58 = vpop.permute.xlu0 %536  ;;  %562 = vst.msk [vmem:[#allocation2 + $0x38] sm:$0xff] %vm554_vm7, %v545_v61 }
 0x111   : > { %558 = vst.msk [vmem:[#allocation2 + $0x18] sm:$0xff] %vm554_vm7, %v537_v58  ;;  %941 = vrot.lane.b32.xlu1 %v2316_v46, %s2077_s7  ;;  %vm1254_vm7 = vcmask 720544  }
 0x112   : > { %933 = vrot.lane.b32.xlu0 %v2300_v42, %s2077_s7  ;;  %v1807_v42 = vld [vmem:[%s2131_s19 + $0x1c0] sm:$0xff] }
 0x113   : > { %v592_v59 = vpop.permute.xlu1 %591 }
 0x114   : > { %v584_v36 = vpop.permute.xlu0 %583  ;;  %610 = vst.msk [vmem:[#allocation2 + $0x30] sm:$0xff] %vm603_vm8, %v592_v59  ;;  %v1422_v59 = vld [vmem:[%s2990_s1 + $0x20] sm:$0xff] }
 0x115   : > { %606 = vst.msk [vmem:[#allocation2 + $0x10] sm:$0xff] %vm603_vm8, %v584_v36  ;;  %1088 = vrot.lane.b32.xlu1 %v2456_v4, %s2080_s10  ;;  %v1423_v36 = vld [vmem:[%s2990_s1 + $0x28] sm:$0xff] }
 0x116   : > { %1080 = vrot.lane.b32.xlu0 %v2459_v53, %s2080_s10 }
 0x117   : > { %v742_v37 = vpop.permute.xlu1 %741 }
 0x118   : > { %v734_v17 = vpop.permute.xlu0 %733  ;;  %761 = vst.msk [vmem:[#allocation2 + $0x28] sm:$0xff] %vm755_vm11, %v742_v37  ;;  %v1960_v37 = vpack.c.bf16 %v1423_v36, %v1422_v59 }
 0x119   : > { %757 = vst.msk [vmem:[#allocation2 + $0x8] sm:$0xff] %vm755_vm11, %v734_v17  ;;  %1135 = vrot.lane.b32.xlu1 %v2392_v1, %s2081_s11  ;;  %v2997_v17 = vld [vmem:[#allocation4_spill] sm:$0xff] }
 0x11a   : > { %1127 = vrot.lane.b32.xlu0 %v2395_v9, %s2081_s11 }
 0x11b   : > { %v789_v46 = vpop.permute.xlu1 %788 }
 0x11c   : > { %v781_v4 = vpop.permute.xlu0 %780  ;;  %809 = vst.msk [vmem:[#allocation2 + $0x20] sm:$0xff] %vm804_vm12, %v789_v46 }
 0x11d   : > { %805 = vst.msk [vmem:[#allocation2] sm:$0xff] %vm804_vm12, %v781_v4  ;;  %943 = vrot.lane.b32.xlu1 %v1807_v42, %s2077_s7  ;;  %v1424_v4 = vld [vmem:[%s2990_s1 + $0x30] sm:$0xff] }
 0x11e   : > { %935 = vrot.lane.b32.xlu0 %v2311_v45, %s2077_s7 }
 0x11f   : > { %v594_v53 = vpop.permute.xlu1 %593 }
 0x120   : > { %v586_v0 = vpop.permute.xlu0 %585  ;;  %611 = vst.msk [vmem:[#allocation2 + $0x38] sm:$0xff] %vm603_vm8, %v594_v53  ;;  %v1425_v53 = vld [vmem:[%s2990_s1 + $0x38] sm:$0xff] }
 0x121   : > { %607 = vst.msk [vmem:[#allocation2 + $0x18] sm:$0xff] %vm603_vm8, %v586_v0  ;;  %992 = vrot.lane.b32.xlu1 %v2408_v33, %s2078_s8  ;;  %v1815_v33 = vld [vmem:[%s2131_s19 + $0x260] sm:$0xff]  ;;  %v1964_v0 = vpack.c.bf16 %v1425_v53, %v1424_v4  ;;  %vm1303_vm8 = vcmask 753344  }
 0x122   : > { %984 = vrot.lane.b32.xlu0 %v2411_v41, %s2078_s8 }
 0x123   : > { %v641_v1 = vpop.permute.xlu1 %640 }
 0x124   : > { %v633_v9 = vpop.permute.xlu0 %632  ;;  %659 = vst.msk [vmem:[#allocation2 + $0x30] sm:$0xff] %vm652_vm9, %v641_v1  ;;  %v1869_v1 = vld [vmem:[%s2131_s19 + $0x111] sm:$0xff] }
 0x125   : > { %655 = vst.msk [vmem:[#allocation2 + $0x10] sm:$0xff] %vm652_vm9, %v633_v9  ;;  %1137 = vrot.lane.b32.xlu1 %v2492_v12, %s2081_s11  ;;  %v1865_v9 = vld [vmem:[%s2131_s19 + $0xd1] sm:$0xff] }
 0x126   : > { %1129 = vrot.lane.b32.xlu0 %v2495_v3, %s2081_s11 }
 0x127   : > { %v791_v45 = vpop.permute.xlu1 %790 }
 0x128   : > { %v783_v6 = vpop.permute.xlu0 %782  ;;  %810 = vst.msk [vmem:[#allocation2 + $0x28] sm:$0xff] %vm804_vm12, %v791_v45 }
 0x129   : > { %806 = vst.msk [vmem:[#allocation2 + $0x8] sm:$0xff] %vm804_vm12, %v783_v6  ;;  %1187 = vrot.lane.b32.xlu1 %v2222_v21, %s2082_s16 }
 0x12a   : > { %1179 = vrot.lane.b32.xlu0 %v2186_v14, %s2082_s16 }
 0x12b   : > { %v838_v41 = vpop.permute.xlu1 %837 }
 0x12c   : > { %v830_v12 = vpop.permute.xlu0 %829  ;;  %858 = vst.msk [vmem:[#allocation2 + $0x20] sm:$0xff] %vm853_vm13, %v838_v41  ;;  %v1876_v41 = vld [vmem:[%s2131_s19 + $0x62] sm:$0xff] }
 0x12d   : > { %854 = vst.msk [vmem:[#allocation2] sm:$0xff] %vm853_vm13, %v830_v12  ;;  %994 = vrot.lane.b32.xlu1 %v1815_v33, %s2078_s8  ;;  %v1426_v33 = vld [vmem:[%s2990_s1 + $0x40] sm:$0xff] }
 0x12e   : > { %986 = vrot.lane.b32.xlu0 %v2324_v48, %s2078_s8  ;;  %v1848_v48 = vld [vmem:[%s2131_s19 + $0xc0] sm:$0xff] }
 0x12f   : > { %v643_v3 = vpop.permute.xlu1 %642  ;;  %v1872_v12 = vld [vmem:[%s2131_s19 + $0x22] sm:$0xff] }
 0x130   : > { %v635_v39 = vpop.permute.xlu0 %634  ;;  %660 = vst.msk [vmem:[#allocation2 + $0x38] sm:$0xff] %vm652_vm9, %v643_v3 }
 0x131   : > { %656 = vst.msk [vmem:[#allocation2 + $0x18] sm:$0xff] %vm652_vm9, %v635_v39  ;;  %1041 = vrot.lane.b32.xlu1 %v2444_v15, %s2079_s9  ;;  %vm1352_vm9 = vcmask 786144  }
 0x132   : > { %1033 = vrot.lane.b32.xlu0 %v2447_v25, %s2079_s9 }
 0x133   : > { %v693_v14 = vpop.permute.xlu1 %692 }
 0x134   : > { %v685_v21 = vpop.permute.xlu0 %684  ;;  %711 = vst.msk [vmem:[#allocation2 + $0x30] sm:$0xff] %vm704_vm10, %v693_v14  ;;  %v1428_v14 = vld [vmem:[%s2990_s1 + $0x50] sm:$0xff] }
 0x135   : > { %707 = vst.msk [vmem:[#allocation2 + $0x10] sm:$0xff] %vm704_vm10, %v685_v21  ;;  %1189 = vrot.lane.b32.xlu1 %v2213_v20, %s2082_s16  ;;  %v1823_v20 = vld [vmem:[%s2131_s19 + $0x1c1] sm:$0xff]  ;;  %v1429_v21 = vld [vmem:[%s2990_s1 + $0x58] sm:$0xff] }
 0x136   : > { %1181 = vrot.lane.b32.xlu0 %v2199_v18, %s2082_s16 }
 0x137   : > { %v840_v35 = vpop.permute.xlu1 %839 }
 0x138   : > { %v832_v44 = vpop.permute.xlu0 %831  ;;  %859 = vst.msk [vmem:[#allocation2 + $0x28] sm:$0xff] %vm853_vm13, %v840_v35  ;;  %v1847_v35 = vld [vmem:[%s2131_s19 + $0x90] sm:$0xff] }
 0x139   : > { %855 = vst.msk [vmem:[#allocation2 + $0x8] sm:$0xff] %vm853_vm13, %v832_v44  ;;  %1238 = vrot.lane.b32.xlu1 %v2158_v7, %s2083_s17 }
 0x13a   : > { %1230 = vrot.lane.b32.xlu0 %v1848_v48, %s2083_s17  ;;  %v1972_v48 = vpack.c.bf16 %v1429_v21, %v1428_v14 }
 0x13b   : > { %v887_v15 = vpop.permute.xlu1 %886 }
 0x13c   : > { %v879_v25 = vpop.permute.xlu0 %878  ;;  %907 = vst.msk [vmem:[#allocation2 + $0x20] sm:$0xff] %vm902_vm14, %v887_v15  ;;  %v1430_v15 = vld [vmem:[%s2990_s1 + $0x60] sm:$0xf] }
 0x13d   : > { %903 = vst.msk [vmem:[#allocation2] sm:$0xff] %vm902_vm14, %v879_v25  ;;  %1043 = vrot.lane.b32.xlu1 %v1823_v20, %s2079_s9  ;;  %v2998_v25 = vld [vmem:[#allocation3_spill] sm:$0xff] }
 0x13e   : > { %1035 = vrot.lane.b32.xlu0 %v2341_v52, %s2079_s9  ;;  %v1860_v52 = vld [vmem:[%s2131_s19 + $0x61] sm:$0xff] }
 0x13f   : > { %v695_v7 = vpop.permute.xlu1 %694 }
 0x140   : > { %v687_v18 = vpop.permute.xlu0 %686  ;;  %712 = vst.msk [vmem:[#allocation2 + $0x38] sm:$0xff] %vm704_vm10, %v695_v7  ;;  %v1850_v7 = vld [vmem:[%s2131_s19 + $0xe0] sm:$0xff] }
 0x141   : > { %708 = vst.msk [vmem:[#allocation2 + $0x18] sm:$0xff] %vm704_vm10, %v687_v18  ;;  %1090 = vrot.lane.b32.xlu1 %v2480_v16, %s2080_s10  ;;  %vm1401_vm10 = vcmask 818944  }
 0x142   : > { %1082 = vrot.lane.b32.xlu0 %v2483_v49, %s2080_s10  ;;  %v1831_v49 = vld [vmem:[%s2131_s19 + $0x261] sm:$0xff] }
 0x143   : > { %v744_v5 = vpop.permute.xlu1 %743 }
 0x144   : > { %v736_v31 = vpop.permute.xlu0 %735  ;;  %762 = vst.msk [vmem:[#allocation2 + $0x30] sm:$0xff] %vm755_vm11, %v744_v5  ;;  %v1873_v5 = vld [vmem:[%s2131_s19 + $0x32] sm:$0xff] }
 0x145   : > { %758 = vst.msk [vmem:[#allocation2 + $0x10] sm:$0xff] %vm755_vm11, %v736_v31  ;;  %1240 = vrot.lane.b32.xlu1 %v1853_v40, %s2083_s17 }
 0x146   : > { %1232 = vrot.lane.b32.xlu0 %v1849_v11, %s2083_s17  ;;  %v1877_v11 = vld [vmem:[%s2131_s19 + $0x72] sm:$0xff] }
 0x147   : > { %v889_v47 = vpop.permute.xlu1 %888 }
 0x148   : > { %v881_v16 = vpop.permute.xlu0 %880  ;;  %908 = vst.msk [vmem:[#allocation2 + $0x28] sm:$0xff] %vm902_vm14, %v889_v47  ;;  %v1851_v47 = vld [vmem:[%s2131_s19 + $0xf0] sm:$0xff] }
 0x149   : > { %904 = vst.msk [vmem:[#allocation2 + $0x8] sm:$0xff] %vm902_vm14, %v881_v16  ;;  %1287 = vrot.lane.b32.xlu1 %v1860_v52, %s2084_s18 }
 0x14a   : > { %1279 = vrot.lane.b32.xlu0 %v1856_v22, %s2084_s18  ;;  %v1855_v22 = vld [vmem:[%s2131_s19 + $0x130] sm:$0xff] }
 0x14b   : > { %v938_v43 = vpop.permute.xlu1 %937 }
 0x14c   : > { %v930_v50 = vpop.permute.xlu0 %929  ;;  %958 = vst.msk [vmem:[#allocation2 + $0x20] sm:$0xff] %vm953_vm15, %v938_v43 }
 0x14d   : > { %954 = vst.msk [vmem:[#allocation2] sm:$0xff] %vm953_vm15, %v930_v50  ;;  %1092 = vrot.lane.b32.xlu1 %v1831_v49, %s2080_s10  ;;  %v1858_v49 = vld [vmem:[%s2131_s19 + $0x41] sm:$0xff] }
 0x14e   : > { %1084 = vrot.lane.b32.xlu0 %v2358_v56, %s2080_s10  ;;  %v1418_v56 = vld [vmem:[%s2990_s1] sm:$0xff] }
 0x14f   : > { %v746_v51 = vpop.permute.xlu1 %745 }
 0x150   : > { %v738_v8 = vpop.permute.xlu0 %737  ;;  %763 = vst.msk [vmem:[#allocation2 + $0x38] sm:$0xff] %vm755_vm11, %v746_v51  ;;  %v1863_v51 = vld [vmem:[%s2131_s19 + $0x91] sm:$0xff] }
 0x151   : > { %759 = vst.msk [vmem:[#allocation2 + $0x18] sm:$0xff] %vm755_vm11, %v738_v8  ;;  %1139 = vrot.lane.b32.xlu1 %v2516_v60, %s2081_s11  ;;  %v1952_v60 = vpack.c.bf16 %v1419_v63, %v1418_v56  ;;  %v1859_v8 = vld [vmem:[%s2131_s19 + $0x51] sm:$0xff]  ;;  %vm1438_vm11 = vcmask 818176  }
 0x152   : > { %1131 = vrot.lane.b32.xlu0 %v2519_v23, %s2081_s11  ;;  %v1868_v23 = vld [vmem:[%s2131_s19 + $0x101] sm:$0xff]  ;;  %v1871_v56 = vld [vmem:[%s2131_s19 + $0x131] sm:$0xff] }
 0x153   : > { %v793_v30 = vpop.permute.xlu1 %792  ;;  %1953 = vmatprep.subr.bf16.mxu0 %v1952_v60  ;;  %1976 = vmatprep.subr.bf16.mxu1 %v1952_v60  ;;  %v1867_v63 = vld [vmem:[%s2131_s19 + $0xf1] sm:$0xff] }
 0x154   : > { %v785_v62 = vpop.permute.xlu0 %784  ;;  %811 = vst.msk [vmem:[#allocation2 + $0x30] sm:$0xff] %vm804_vm12, %v793_v30  ;;  %1955 = vmatpush3.bf16.msra.mxu0 %v1952_v60  ;;  %1983 = vmatpush3.bf16.msra.mxu1 %v1952_v60  ;;  %v1866_v30 = vld [vmem:[%s2131_s19 + $0xe1] sm:$0xff] }
 0x155   : > { %807 = vst.msk [vmem:[#allocation2 + $0x10] sm:$0xff] %vm804_vm12, %v785_v62  ;;  %1289 = vrot.lane.b32.xlu1 %v1861_v13, %s2084_s18  ;;  %1957 = vmatprep.subr.bf16.mxu0 %v1956_v38 }
 0x156   : > { %1281 = vrot.lane.b32.xlu0 %v1857_v27, %s2084_s18  ;;  %1977 = vmatprep.subr.bf16.mxu1 %v1956_v38 }
 0x157   : > { %v940_v55 = vpop.permute.xlu1 %939 }
 0x158   : > { %v932_v24 = vpop.permute.xlu0 %931  ;;  %959 = vst.msk [vmem:[#allocation2 + $0x28] sm:$0xff] %vm953_vm15, %v940_v55  ;;  %1959 = vmatpush3.bf16.msra.mxu0 %v1956_v38  ;;  %1984 = vmatpush3.bf16.msra.mxu1 %v1956_v38 }
 0x159   : > { %955 = vst.msk [vmem:[#allocation2 + $0x8] sm:$0xff] %vm953_vm15, %v932_v24  ;;  %1336 = vrot.lane.b32.xlu1 %v1868_v23, %s2085_s28  ;;  %1961 = vmatprep.subr.bf16.mxu0 %v1960_v37  ;;  %v1879_v24 = vld [vmem:[%s2131_s19 + $0x92] sm:$0xff] }
 0x15a   : > { %1328 = vrot.lane.b32.xlu0 %v1864_v54, %s2085_s28  ;;  %1978 = vmatprep.subr.bf16.mxu1 %v1960_v37  ;;  %v1874_v54 = vld [vmem:[%s2131_s19 + $0x42] sm:$0xff]  ;;  %s1892_s19 = sshll.u32 %s3004_s12, 6 }
 0x15b   : > { %v989_v61 = vpop.permute.xlu1 %988  ;;  %s192_s30 = scalar_lea.vmem %s2992_s3, %s1892_s19 }
 0x15c   : > { %v981_v58 = vpop.permute.xlu0 %980  ;;  %1009 = vst.msk [vmem:[#allocation2 + $0x20] sm:$0xff] %vm1004_vm1, %v989_v61  ;;  %1963 = vmatpush3.bf16.msra.mxu0 %v1960_v37  ;;  %1985 = vmatpush3.bf16.msra.mxu1 %v1960_v37 }
 0x15d   : > { %1005 = vst.msk [vmem:[#allocation2] sm:$0xff] %vm1004_vm1, %v981_v58  ;;  %1141 = vrot.lane.b32.xlu1 %v1839_v57, %s2081_s11  ;;  %1965 = vmatprep.subr.bf16.mxu0 %v1964_v0 }
 0x15e   : > { %1133 = vrot.lane.b32.xlu0 %v2997_v17, %s2081_s11  ;;  %1979 = vmatprep.subr.bf16.mxu1 %v1964_v0 }
 0x15f   : > { %v795_v42 = vpop.permute.xlu1 %794 }
 0x160   : > { %v787_v46 = vpop.permute.xlu0 %786  ;;  %812 = vst.msk [vmem:[#allocation2 + $0x38] sm:$0xff] %vm804_vm12, %v795_v42  ;;  %1967 = vmatpush3.bf16.msra.mxu0 %v1964_v0  ;;  %1986 = vmatpush3.bf16.msra.mxu1 %v1964_v0 }
 0x161   : > { %808 = vst.msk [vmem:[#allocation2 + $0x18] sm:$0xff] %vm804_vm12, %v787_v46  ;;  %1191 = vrot.lane.b32.xlu1 %v2546_v28, %s2082_s16  ;;  %v1427_v28 = vld [vmem:[%s2990_s1 + $0x48] sm:$0xff] }
 0x162   : > { %1183 = vrot.lane.b32.xlu0 %v2208_v19, %s2082_s16  ;;  %v1968_v19 = vpack.c.bf16 %v1427_v28, %v1426_v33 }
 0x163   : > { %v842_v45 = vpop.permute.xlu1 %841 }
 0x164   : > { %v834_v6 = vpop.permute.xlu0 %833  ;;  %860 = vst.msk [vmem:[#allocation2 + $0x30] sm:$0xff] %vm853_vm13, %v842_v45  ;;  %1969 = vmatprep.subr.bf16.mxu0 %v1968_v19  ;;  %1980 = vmatprep.subr.bf16.mxu1 %v1968_v19 }
 0x165   : > { %856 = vst.msk [vmem:[#allocation2 + $0x10] sm:$0xff] %vm853_vm13, %v834_v6  ;;  %1338 = vrot.lane.b32.xlu1 %v1869_v1, %s2085_s28  ;;  %1971 = vmatpush3.bf16.msra.mxu0 %v1968_v19 }
 0x166   : > { %1330 = vrot.lane.b32.xlu0 %v1865_v9, %s2085_s28  ;;  %1987 = vmatpush3.bf16.msra.mxu1 %v1968_v19 }
 0x167   : > { %v991_v3 = vpop.permute.xlu1 %990  ;;  %1973 = vmatprep.subr.bf16.mxu0 %v1972_v48  ;;  %1981 = vmatprep.subr.bf16.mxu1 %v1972_v48 }
 0x168   : > { %v983_v39 = vpop.permute.xlu0 %982  ;;  %1010 = vst.msk [vmem:[#allocation2 + $0x28] sm:$0xff] %vm1004_vm1, %v991_v3 }
 0x169   : > { %1006 = vst.msk [vmem:[#allocation2 + $0x8] sm:$0xff] %vm1004_vm1, %v983_v39  ;;  %1385 = vrot.lane.b32.xlu1 %v1876_v41, %s2086_s26  ;;  %1975 = vmatpush3.bf16.msra.mxu0 %v1972_v48 }
 0x16a   : > { %1377 = vrot.lane.b32.xlu0 %v1872_v12, %s2086_s26  ;;  %1988 = vmatpush3.bf16.msra.mxu1 %v1972_v48 }
 0x16b   : > { %v1038_v44 = vpop.permute.xlu1 %1037  ;;  %1938 = vmatprep.subr.msk.mxu0 %vm1463_vm3, %v1430_v15  ;;  %1982 = vmatprep.subr.msk.mxu1 %vm1463_vm3, %v1430_v15 }
 0x16c   : > { %v1030_v20 = vpop.permute.xlu0 %1029  ;;  %1058 = vst.msk [vmem:[#allocation2 + $0x20] sm:$0xff] %vm1053_vm2, %v1038_v44 }
 0x16d   : > { %1054 = vst.msk [vmem:[#allocation2] sm:$0xff] %vm1053_vm2, %v1030_v20  ;;  %1193 = vrot.lane.b32.xlu1 %v1847_v35, %s2082_s16  ;;  %1939 = vmatpush3.msk.msra.mxu0 %vm1463_vm3, %v1430_v15 }
 0x16e   : > { %1185 = vrot.lane.b32.xlu0 %v2998_v25, %s2082_s16  ;;  %1989 = vmatpush3.msk.msra.mxu1 %vm1463_vm3, %v1430_v15 }
 0x16f   : > { %v844_v18 = vpop.permute.xlu1 %843 }
 0x170   : > { %v836_v40 = vpop.permute.xlu0 %835  ;;  %861 = vst.msk [vmem:[#allocation2 + $0x38] sm:$0xff] %vm853_vm13, %v844_v18 }
 0x171   : > { %857 = vst.msk [vmem:[#allocation2 + $0x18] sm:$0xff] %vm853_vm13, %v836_v40  ;;  %1242 = vrot.lane.b32.xlu1 %v2573_v2, %s2083_s17 }
 0x172   : > { %1234 = vrot.lane.b32.xlu0 %v1850_v7, %s2083_s17 }
 0x173   : > { %v891_v31 = vpop.permute.xlu1 %890 }
 0x174   : > { %v883_v52 = vpop.permute.xlu0 %882  ;;  %909 = vst.msk [vmem:[#allocation2 + $0x30] sm:$0xff] %vm902_vm14, %v891_v31 }
 0x175   : > { %905 = vst.msk [vmem:[#allocation2 + $0x10] sm:$0xff] %vm902_vm14, %v883_v52  ;;  %1387 = vrot.lane.b32.xlu1 %v1877_v11, %s2086_s26 }
 0x176   : > { %1379 = vrot.lane.b32.xlu0 %v1873_v5, %s2086_s26 }
 0x177   : > { %v1040_v2 = vpop.permute.xlu1 %1039 }
 0x178   : > { %v1032_v16 = vpop.permute.xlu0 %1031  ;;  %1059 = vst.msk [vmem:[#allocation2 + $0x28] sm:$0xff] %vm1053_vm2, %v1040_v2 }
 0x179   : > { %1055 = vst.msk [vmem:[#allocation2 + $0x8] sm:$0xff] %vm1053_vm2, %v1032_v16  ;;  %1244 = vrot.lane.b32.xlu1 %v1855_v22, %s2083_s17 }
 0x17a   : > { %1236 = vrot.lane.b32.xlu0 %v1851_v47, %s2083_s17 }
 0x17b   : > { %v1087_v43 = vpop.permute.xlu1 %1086 }
 0x17c   : > { %v1079_v50 = vpop.permute.xlu0 %1078  ;;  %1107 = vst.msk [vmem:[#allocation2 + $0x20] sm:$0xff] %vm1102_vm4, %v1087_v43 }
 0x17d   : > { %1103 = vst.msk [vmem:[#allocation2] sm:$0xff] %vm1102_vm4, %v1079_v50  ;;  %1291 = vrot.lane.b32.xlu1 %v2600_v10, %s2084_s18 }
 0x17e   : > { %1283 = vrot.lane.b32.xlu0 %v1858_v49, %s2084_s18 }
 0x17f   : > { %v893_v13 = vpop.permute.xlu1 %892 }
 0x180   : > { %v885_v27 = vpop.permute.xlu0 %884  ;;  %910 = vst.msk [vmem:[#allocation2 + $0x38] sm:$0xff] %vm902_vm14, %v893_v13 }
 0x181   : > { %906 = vst.msk [vmem:[#allocation2 + $0x18] sm:$0xff] %vm902_vm14, %v885_v27  ;;  %1293 = vrot.lane.b32.xlu1 %v1863_v51, %s2084_s18 }
 0x182   : > { %1285 = vrot.lane.b32.xlu0 %v1859_v8, %s2084_s18 }
 0x183   : > { %v942_v62 = vpop.permute.xlu1 %941 }
 0x184   : > { %v934_v10 = vpop.permute.xlu0 %933  ;;  %960 = vst.msk [vmem:[#allocation2 + $0x30] sm:$0xff] %vm953_vm15, %v942_v62 }
 0x185   : > { %956 = vst.msk [vmem:[#allocation2 + $0x10] sm:$0xff] %vm953_vm15, %v934_v10  ;;  %1340 = vrot.lane.b32.xlu1 %v2627_v26, %s2085_s28 }
 0x186   : > { %1332 = vrot.lane.b32.xlu0 %v1866_v30, %s2085_s28 }
 0x187   : > { %v1089_v60 = vpop.permute.xlu1 %1088 }
 0x188   : > { %v1081_v23 = vpop.permute.xlu0 %1080  ;;  %1108 = vst.msk [vmem:[#allocation2 + $0x28] sm:$0xff] %vm1102_vm4, %v1089_v60 }
 0x189   : > { %1104 = vst.msk [vmem:[#allocation2 + $0x8] sm:$0xff] %vm1102_vm4, %v1081_v23  ;;  %1342 = vrot.lane.b32.xlu1 %v1871_v56, %s2085_s28 }
 0x18a   : > { %1334 = vrot.lane.b32.xlu0 %v1867_v63, %s2085_s28 }
 0x18b   : > { %v1136_v55 = vpop.permute.xlu1 %1135 }
 0x18c   : > { %v1128_v26 = vpop.permute.xlu0 %1127  ;;  %1156 = vst.msk [vmem:[#allocation2 + $0x20] sm:$0xff] %vm1151_vm5, %v1136_v55 }
 0x18d   : > { %1152 = vst.msk [vmem:[#allocation2] sm:$0xff] %vm1151_vm5, %v1128_v26  ;;  %1389 = vrot.lane.b32.xlu1 %v2654_v34, %s2086_s26 }
 0x18e   : > { %1381 = vrot.lane.b32.xlu0 %v1874_v54, %s2086_s26 }
 0x18f   : > { %v944_v32 = vpop.permute.xlu1 %943 }
 0x190   : > { %v936_v38 = vpop.permute.xlu0 %935  ;;  %961 = vst.msk [vmem:[#allocation2 + $0x38] sm:$0xff] %vm953_vm15, %v944_v32 }
 0x191   : > { %957 = vst.msk [vmem:[#allocation2 + $0x18] sm:$0xff] %vm953_vm15, %v936_v38  ;;  %1391 = vrot.lane.b32.xlu1 %v1879_v24, %s2086_s26 }
 0x192   : > { %1383 = vrot.lane.b32.xlu0 %v1875_v29, %s2086_s26 }
 0x193   : > { %v993_v57 = vpop.permute.xlu1 %992 }
 0x194   : > { %v985_v61 = vpop.permute.xlu0 %984  ;;  %1011 = vst.msk [vmem:[#allocation2 + $0x30] sm:$0xff] %vm1004_vm1, %v993_v57 }
 0x195   : > { %1007 = vst.msk [vmem:[#allocation2 + $0x10] sm:$0xff] %vm1004_vm1, %v985_v61 }
 0x197   : > { %v1138_v34 = vpop.permute.xlu1 %1137 }
 0x198   : > { %v1130_v58 = vpop.permute.xlu0 %1129  ;;  %1157 = vst.msk [vmem:[#allocation2 + $0x28] sm:$0xff] %vm1151_vm5, %v1138_v34  ;;  %v1880_v34 = vld [vmem:[%s2991_s2] ss:$0 sm:$0xff] }
 0x199   : > { %1153 = vst.msk [vmem:[#allocation2 + $0x8] sm:$0xff] %vm1151_vm5, %v1130_v58 }
 0x19b   : > { %v1188_v59 = vpop.permute.xlu1 %1187 }
 0x19c   : > { %v1180_v36 = vpop.permute.xlu0 %1179  ;;  %1208 = vst.msk [vmem:[#allocation2 + $0x20] sm:$0xff] %vm1203_vm6, %v1188_v59 }
 0x19d   : > { %1204 = vst.msk [vmem:[#allocation2] sm:$0xff] %vm1203_vm6, %v1180_v36 }
 0x19f   : > { %v995_v37 = vpop.permute.xlu1 %994 }
 0x1a0   : > { %v987_v17 = vpop.permute.xlu0 %986  ;;  %1012 = vst.msk [vmem:[#allocation2 + $0x38] sm:$0xff] %vm1004_vm1, %v995_v37 }
 0x1a1   : > { %1008 = vst.msk [vmem:[#allocation2 + $0x18] sm:$0xff] %vm1004_vm1, %v987_v17 }
 0x1a3   : > { %v1042_v42 = vpop.permute.xlu1 %1041 }
 0x1a4   : > { %v1034_v46 = vpop.permute.xlu0 %1033  ;;  %1060 = vst.msk [vmem:[#allocation2 + $0x30] sm:$0xff] %vm1053_vm2, %v1042_v42 }
 0x1a5   : > { %1056 = vst.msk [vmem:[#allocation2 + $0x10] sm:$0xff] %vm1053_vm2, %v1034_v46 }
 0x1a7   : > { %v1190_v4 = vpop.permute.xlu1 %1189 }
 0x1a8   : > { %v1182_v53 = vpop.permute.xlu0 %1181  ;;  %1209 = vst.msk [vmem:[#allocation2 + $0x28] sm:$0xff] %vm1203_vm6, %v1190_v4 }
 0x1a9   : > { %1205 = vst.msk [vmem:[#allocation2 + $0x8] sm:$0xff] %vm1203_vm6, %v1182_v53 }
 0x1ab   : > { %v1239_v0 = vpop.permute.xlu1 %1238 }
 0x1ac   : > { %v1231_v1 = vpop.permute.xlu0 %1230  ;;  %1259 = vst.msk [vmem:[#allocation2 + $0x20] sm:$0xff] %vm1254_vm7, %v1239_v0 }
 0x1ad   : > { %1255 = vst.msk [vmem:[#allocation2] sm:$0xff] %vm1254_vm7, %v1231_v1 }
 0x1af   : > { %v1044_v9 = vpop.permute.xlu1 %1043 }
 0x1b0   : > { %v1036_v45 = vpop.permute.xlu0 %1035  ;;  %1061 = vst.msk [vmem:[#allocation2 + $0x38] sm:$0xff] %vm1053_vm2, %v1044_v9 }
 0x1b1   : > { %1057 = vst.msk [vmem:[#allocation2 + $0x18] sm:$0xff] %vm1053_vm2, %v1036_v45 }
 0x1b3   : > { %v1091_v6 = vpop.permute.xlu1 %1090 }
 0x1b4   : > { %v1083_v33 = vpop.permute.xlu0 %1082  ;;  %1109 = vst.msk [vmem:[#allocation2 + $0x30] sm:$0xff] %vm1102_vm4, %v1091_v6 }
 0x1b5   : > { %1105 = vst.msk [vmem:[#allocation2 + $0x10] sm:$0xff] %vm1102_vm4, %v1083_v33 }
 0x1b7   : > { %v1241_v28 = vpop.permute.xlu1 %1240 }
 0x1b8   : > { %v1233_v19 = vpop.permute.xlu0 %1232  ;;  %1260 = vst.msk [vmem:[#allocation2 + $0x28] sm:$0xff] %vm1254_vm7, %v1241_v28 }
 0x1b9   : > { %1256 = vst.msk [vmem:[#allocation2 + $0x8] sm:$0xff] %vm1254_vm7, %v1233_v19 }
 0x1bb   : > { %v1288_v41 = vpop.permute.xlu1 %1287 }
 0x1bc   : > { %v1280_v12 = vpop.permute.xlu0 %1279  ;;  %1308 = vst.msk [vmem:[#allocation2 + $0x20] sm:$0xff] %vm1303_vm8, %v1288_v41 }
 0x1bd   : > { %1304 = vst.msk [vmem:[#allocation2] sm:$0xff] %vm1303_vm8, %v1280_v12 }
 0x1bf   : > { %v1093_v3 = vpop.permute.xlu1 %1092 }
 0x1c0   : > { %v1085_v39 = vpop.permute.xlu0 %1084  ;;  %1110 = vst.msk [vmem:[#allocation2 + $0x38] sm:$0xff] %vm1102_vm4, %v1093_v3 }
 0x1c1   : > { %1106 = vst.msk [vmem:[#allocation2 + $0x18] sm:$0xff] %vm1102_vm4, %v1085_v39 }
 0x1c3   : > { %v1140_v14 = vpop.permute.xlu1 %1139 }
 0x1c4   : > { %v1132_v21 = vpop.permute.xlu0 %1131  ;;  %1158 = vst.msk [vmem:[#allocation2 + $0x30] sm:$0xff] %vm1151_vm5, %v1140_v14 }
 0x1c5   : > { %1154 = vst.msk [vmem:[#allocation2 + $0x10] sm:$0xff] %vm1151_vm5, %v1132_v21 }
 0x1c7   : > { %v1290_v48 = vpop.permute.xlu1 %1289 }
 0x1c8   : > { %v1282_v35 = vpop.permute.xlu0 %1281  ;;  %1309 = vst.msk [vmem:[#allocation2 + $0x28] sm:$0xff] %vm1303_vm8, %v1290_v48 }
 0x1c9   : > { %1305 = vst.msk [vmem:[#allocation2 + $0x8] sm:$0xff] %vm1303_vm8, %v1282_v35 }
 0x1cb   : > { %v1337_v44 = vpop.permute.xlu1 %1336 }
 0x1cc   : > { %v1329_v20 = vpop.permute.xlu0 %1328  ;;  %1357 = vst.msk [vmem:[#allocation2 + $0x20] sm:$0xff] %vm1352_vm9, %v1337_v44 }
 0x1cd   : > { %1353 = vst.msk [vmem:[#allocation2] sm:$0xff] %vm1352_vm9, %v1329_v20 }
 0x1cf   : > { %v1142_v15 = vpop.permute.xlu1 %1141 }
 0x1d0   : > { %v1134_v25 = vpop.permute.xlu0 %1133  ;;  %1159 = vst.msk [vmem:[#allocation2 + $0x38] sm:$0xff] %vm1151_vm5, %v1142_v15 }
 0x1d1   : > { %1155 = vst.msk [vmem:[#allocation2 + $0x18] sm:$0xff] %vm1151_vm5, %v1134_v25 }
 0x1d3   : > { %v1192_v7 = vpop.permute.xlu1 %1191 }
 0x1d4   : > { %v1184_v18 = vpop.permute.xlu0 %1183  ;;  %1210 = vst.msk [vmem:[#allocation2 + $0x30] sm:$0xff] %vm1203_vm6, %v1192_v7 }
 0x1d5   : > { %1206 = vst.msk [vmem:[#allocation2 + $0x10] sm:$0xff] %vm1203_vm6, %v1184_v18 }
 0x1d7   : > { %v1339_v40 = vpop.permute.xlu1 %1338 }
 0x1d8   : > { %v1331_v11 = vpop.permute.xlu0 %1330  ;;  %1358 = vst.msk [vmem:[#allocation2 + $0x28] sm:$0xff] %vm1352_vm9, %v1339_v40 }
 0x1d9   : > { %1354 = vst.msk [vmem:[#allocation2 + $0x8] sm:$0xff] %vm1352_vm9, %v1331_v11 }
 0x1db   : > { %v1386_v5 = vpop.permute.xlu1 %1385 }
 0x1dc   : > { %v1378_v31 = vpop.permute.xlu0 %1377  ;;  %1406 = vst.msk [vmem:[#allocation2 + $0x20] sm:$0xff] %vm1401_vm10, %v1386_v5 }
 0x1dd   : > { %1402 = vst.msk [vmem:[#allocation2] sm:$0xff] %vm1401_vm10, %v1378_v31 }
 0x1df   : > { %v1194_v52 = vpop.permute.xlu1 %1193 }
 0x1e0   : > { %v1186_v22 = vpop.permute.xlu0 %1185  ;;  %1211 = vst.msk [vmem:[#allocation2 + $0x38] sm:$0xff] %vm1203_vm6, %v1194_v52 }
 0x1e1   : > { %1207 = vst.msk [vmem:[#allocation2 + $0x18] sm:$0xff] %vm1203_vm6, %v1186_v22 }
 0x1e3   : > { %v1243_v47 = vpop.permute.xlu1 %1242  ;;  %v1414_v49 = vld [vmem:[#allocation2 + $0x20] sm:$0xff] }
 0x1e4   : > { %v1235_v2 = vpop.permute.xlu0 %1234  ;;  %v1410_v16 = vld [vmem:[#allocation2] sm:$0xff]  ;;  %1261 = vst.msk [vmem:[#allocation2 + $0x30] sm:$0xff] %vm1254_vm7, %v1243_v47  ;;  %1946 = vmatprep.mubr.msk.f32.mxu1 %vm1438_vm11, %v1414_v49 }
 0x1e5   : > { %1257 = vst.msk [vmem:[#allocation2 + $0x10] sm:$0xff] %vm1254_vm7, %v1235_v2  ;;  %1940 = vmatprep.mubr.msk.f32.mxu0 %vm1438_vm11, %v1410_v16 }
 0x1e7   : > { %v1388_v43 = vpop.permute.xlu1 %1387 }
 0x1e8   : > { %v1380_v50 = vpop.permute.xlu0 %1379  ;;  %1407 = vst.msk [vmem:[#allocation2 + $0x28] sm:$0xff] %vm1401_vm10, %v1388_v43 }
 0x1e9   : > { %1403 = vst.msk [vmem:[#allocation2 + $0x8] sm:$0xff] %vm1401_vm10, %v1380_v50 }
 0x1eb   : > { %v1245_v51 = vpop.permute.xlu1 %1244 }
 0x1ec   : > { %v1237_v8 = vpop.permute.xlu0 %1236  ;;  %1262 = vst.msk [vmem:[#allocation2 + $0x38] sm:$0xff] %vm1254_vm7, %v1245_v51 }
 0x1ed   : > { %1258 = vst.msk [vmem:[#allocation2 + $0x18] sm:$0xff] %vm1254_vm7, %v1237_v8 }
 0x1ef   : > { %v1292_v13 = vpop.permute.xlu1 %1291  ;;  %v1415_v62 = vld [vmem:[#allocation2 + $0x28] sm:$0xff] }
 0x1f0   : > { %v1284_v27 = vpop.permute.xlu0 %1283  ;;  %v1411_v30 = vld [vmem:[#allocation2 + $0x8] sm:$0xff]  ;;  %1310 = vst.msk [vmem:[#allocation2 + $0x30] sm:$0xff] %vm1303_vm8, %v1292_v13  ;;  %1947 = vmatmul.mubr.msk.f32.vlgmr.msra.gmra.mrb[0].mxu1 %vm1438_vm11, %v1415_v62 }
 0x1f1   : > { %1306 = vst.msk [vmem:[#allocation2 + $0x10] sm:$0xff] %vm1303_vm8, %v1284_v27  ;;  %1941 = vmatmul.mubr.msk.f32.vlgmr.msra.gmra.mrb[0].mxu0 %vm1438_vm11, %v1411_v30 }
 0x1f3   : > { %v1294_v10 = vpop.permute.xlu1 %1293 }
 0x1f4   : > { %v1286_v56 = vpop.permute.xlu0 %1285  ;;  %1311 = vst.msk [vmem:[#allocation2 + $0x38] sm:$0xff] %vm1303_vm8, %v1294_v10 }
 0x1f5   : > { %1307 = vst.msk [vmem:[#allocation2 + $0x18] sm:$0xff] %vm1303_vm8, %v1286_v56 }
 0x1f7   : > { %v1341_v63 = vpop.permute.xlu1 %1340 }
 0x1f8   : > { %v1333_v60 = vpop.permute.xlu0 %1332  ;;  %1359 = vst.msk [vmem:[#allocation2 + $0x30] sm:$0xff] %vm1352_vm9, %v1341_v63 }
 0x1f9   : > { %1355 = vst.msk [vmem:[#allocation2 + $0x10] sm:$0xff] %vm1352_vm9, %v1333_v60 }
 0x1fb   : > { %v1343_v23 = vpop.permute.xlu1 %1342 }
 0x1fc   : > { %v1335_v54 = vpop.permute.xlu0 %1334  ;;  %1360 = vst.msk [vmem:[#allocation2 + $0x38] sm:$0xff] %vm1352_vm9, %v1343_v23 }
 0x1fd   : > { %1356 = vst.msk [vmem:[#allocation2 + $0x18] sm:$0xff] %vm1352_vm9, %v1335_v54 }
 0x1ff   : > { %v1390_v55 = vpop.permute.xlu1 %1389 }
 0x200   : > { %v1382_v26 = vpop.permute.xlu0 %1381  ;;  %1408 = vst.msk [vmem:[#allocation2 + $0x30] sm:$0xff] %vm1401_vm10, %v1390_v55 }
 0x201   : > { %1404 = vst.msk [vmem:[#allocation2 + $0x10] sm:$0xff] %vm1401_vm10, %v1382_v26 }
 0x203   : > { %v1392_v24 = vpop.permute.xlu1 %1391 }
 0x204   : > { %v1384_v29 = vpop.permute.xlu0 %1383  ;;  %1409 = vst.msk [vmem:[#allocation2 + $0x38] sm:$0xff] %vm1401_vm10, %v1392_v24 }
 0x205   : > { %1405 = vst.msk [vmem:[#allocation2 + $0x18] sm:$0xff] %vm1401_vm10, %v1384_v29 }
 0x207   : > { %v1416_v38 = vld [vmem:[#allocation2 + $0x30] sm:$0xff] }
 0x208   : > { %v1412_v32 = vld [vmem:[#allocation2 + $0x10] sm:$0xff]  ;;  %1949 = vmatprep.mubr.msk.f32.mxu1 %vm1438_vm11, %v1416_v38 }
 0x209   : > { %1943 = vmatprep.mubr.msk.f32.mxu0 %vm1438_vm11, %v1412_v32 }
 0x20b   : > { %v1417_v61 = vld [vmem:[#allocation2 + $0x38] sm:$0xff] }
 0x20c   : > { %v1413_v57 = vld [vmem:[#allocation2 + $0x18] sm:$0xff]  ;;  %1950 = vmatmul.mubr.msk.f32.gmra.mrb[2].mxu1 %vm1438_vm11, %v1417_v61 }
 0x20d   : > { %1944 = vmatmul.mubr.msk.f32.gmra.mrb[2].mxu0 %vm1438_vm11, %v1413_v57 }
 0x2c3   : > { %v1948_v59 = vpop.f32.mrb[0].mxu1 }
 0x2c4   : > { %v1942_v58 = vpop.f32.mrb[0].mxu0  ;;  %v1559_v37 = vadd.f32 %v1948_v59, %v1880_v34  ;;  %v1553_v42 = vpop.f32.mrb[1].mxu1 }
 0x2c5   : > { %v1539_v36 = vadd.f32 %v1942_v58, %v1880_v34  ;;  %v1533_v17 = vpop.f32.mrb[1].mxu0  ;;  %v1554_v4 = vadd.f32 %v1880_v34, %v1553_v42 }
 0x2c6   : > { %v1534_v46 = vadd.f32 %v1880_v34, %v1533_v17  ;;  %1577 = vst.msk [vmem:[%s192_s30 + $0x28] sm:$0xff] %vm205_vm0, %v1559_v37 }
 0x2c7   : > { %1573 = vst.msk [vmem:[%s192_s30 + $0x8] sm:$0xff] %vm205_vm0, %v1539_v36  ;;  %1576 = vst.msk [vmem:[%s192_s30 + $0x20] sm:$0xff] %vm205_vm0, %v1554_v4 }
 0x2c8   : > { %1572 = vst.msk [vmem:[%s192_s30] sm:$0xff] %vm205_vm0, %v1534_v46 }
 0x2df   : > { %v1951_v0 = vpop.f32.mrb[2].mxu1 }
 0x2e0   : > { %v1945_v53 = vpop.f32.mrb[2].mxu0  ;;  %v1569_v9 = vadd.f32 %v1951_v0, %v1880_v34  ;;  %v1563_v6 = vpop.f32.mrb[3].mxu1 }
 0x2e1   : > { %v1549_v1 = vadd.f32 %v1945_v53, %v1880_v34  ;;  %v1543_v45 = vpop.f32.mrb[3].mxu0  ;;  %v1564_v28 = vadd.f32 %v1880_v34, %v1563_v6 }
 0x2e2   : > { %v1544_v33 = vadd.f32 %v1880_v34, %v1543_v45  ;;  %1579 = vst.msk [vmem:[%s192_s30 + $0x38] sm:$0xff] %vm205_vm0, %v1569_v9 }
 0x2e3   : > { %1575 = vst.msk [vmem:[%s192_s30 + $0x18] sm:$0xff] %vm205_vm0, %v1549_v1  ;;  %1578 = vst.msk [vmem:[%s192_s30 + $0x30] sm:$0xff] %vm205_vm0, %v1564_v28 }
 0x2e4   : > { %1574 = vst.msk [vmem:[%s192_s30 + $0x10] sm:$0xff] %vm205_vm0, %v1544_v33 }
 0x2e5 PF: > { %s13_s14 = sadd.s32 1, %s2061_s14   ;;  %s2999_s12 = smov %s2057_s13 }
 0x2e6   : > { %p10_p5 = scmp.ge.s32.totalorder %s13_s14, 4   ;;  %s3000_s13 = smov %s3002_s15 }
 0x2e8   :  { %12 = sbr.rel (!%p10_p5) target bundleno = 2 (0x2), region = 72 }

</bundles_post_ra>
